<compile_context>
chip_gen: v6e
topology: v6e:2x2x1
jax: 0.10.0
libtpu: 0.0.40
codegen_flags: <defaults>
</compile_context>

<pallas_src>
import math
import jax
import jax.numpy as jnp
from jax import lax
from jax.experimental import pallas as pl
from jax.experimental.pallas import tpu as pltpu

# ---- small synthetic CLIP config ----
N_CLASSES = 2            # classnames, e.g. ["real", "fake"]
SEQ_T = 8                # text context length
WIDTH = 32               # transformer width (both towers)
HEADS = 4
HEAD_DIM = WIDTH // HEADS
LAYERS = 2
EMBED = 128              # joint embedding dim (multiple of 128 -> lane-dense stores)
VOCAB = 64
EPS = 1e-5

IMG_SIZE = 16
IMG_CH = 3
PATCH = 8
NUM_PATCHES = (IMG_SIZE // PATCH) ** 2      # 4 patches
SEQ_V = 8                                   # 1 CLS + 4 patches, padded to 8 (pad keys masked)
ADAPTER_RATIO = 0.4
NEG_FILL = -1e30                            # Python float -> jaxpr literal (not a captured const)

CUSTOM_TEMPLATE_BIGGAN = 'a {} photo.'


def _ln(x, g, b):
    mu = jnp.mean(x, axis=-1, keepdims=True)
    var = jnp.mean((x - mu) ** 2, axis=-1, keepdims=True)
    return (x - mu) * lax.rsqrt(var + EPS) * g + b


# =====================================================================================
# Fused transformer tower kernel (all layers + final LN + token gather + projection)
# =====================================================================================
def make_tower_kernel(*, seq, width, heads, layers, n_valid, causal):
    head_dim = width // heads
    scale = 1.0 / math.sqrt(head_dim)

    def kernel(gather_ref,                              # SMEM (B,) int32: EOT / CLS position
               x_ref,                                   # (B, S, W) embedded tokens
               ln1_g, ln1_b, wqkv, bqkv, wo, bo,        # stacked (LAYERS, ...)
               ln2_g, ln2_b, w1, b1, w2, b2,            # stacked (LAYERS, ...)
               lnf_g, lnf_b, proj,                      # final LN + projection
               o_ref):                                  # (B, EMBED)
        batch = x_ref.shape[0]
        m = batch * seq
        # fold batch/class dim into the matmul M dimension
        x2 = x_ref[...].astype(jnp.float32).reshape(m, width)

        # attention mask (S, S): valid keys (+ causal for the text tower)
        col = lax.broadcasted_iota(jnp.int32, (seq, seq), 1)
        mask = col < n_valid
        if causal:
            row = lax.broadcasted_iota(jnp.int32, (seq, seq), 0)
            mask = jnp.logical_and(mask, row >= col)
        mask = mask[None]                                # (1, S, S) broadcast over batch

        for l in range(layers):                          # unrolled; weights DMA'd once, VMEM-resident
            # --- multi-head self-attention ---
            h = _ln(x2, ln1_g[l], ln1_b[l])
            qkv = jnp.dot(h, wqkv[l], preferred_element_type=jnp.float32) + bqkv[l]
            q = qkv[:, :width].reshape(batch, seq, width)
            k = qkv[:, width:2 * width].reshape(batch, seq, width)
            v = qkv[:, 2 * width:].reshape(batch, seq, width)
            wo_l = wo[l]
            attn = jnp.zeros((m, width), jnp.float32)
            for hh in range(heads):
                sl = slice(hh * head_dim, (hh + 1) * head_dim)
                s = jnp.einsum('bqd,bkd->bqk', q[:, :, sl], k[:, :, sl],
                               preferred_element_type=jnp.float32) * scale
                s = jnp.where(mask, s, NEG_FILL)
                s = s - jnp.max(s, axis=-1, keepdims=True)
                p = jnp.exp(s)
                p = p * pl.reciprocal(jnp.sum(p, axis=-1, keepdims=True), approx=True)
                oh = jnp.einsum('bqk,bkd->bqd', p, v[:, :, sl],
                                preferred_element_type=jnp.float32)
                # fold the per-head slice of W_out into the accumulation (no head concat)
                attn = attn + jnp.dot(oh.reshape(m, head_dim), wo_l[sl, :],
                                      preferred_element_type=jnp.float32)
            x2 = x2 + attn + bo[l]

            # --- MLP with quick-gelu (CLIP) ---
            h = _ln(x2, ln2_g[l], ln2_b[l])
            h = jnp.dot(h, w1[l], preferred_element_type=jnp.float32) + b1[l]
            h = h * jax.nn.sigmoid(1.702 * h)
            h = jnp.dot(h, w2[l], preferred_element_type=jnp.float32) + b2[l]
            x2 = x2 + h

        # --- fused head: gather EOT/CLS token (masked sublane reduction), final LN, projection ---
        row_ids = lax.broadcasted_iota(jnp.int32, (m, 1), 0)         # (m, 1)
        rows = []
        for b in range(batch):
            idx = gather_ref[b]                                       # SMEM scalar read
            sel = (row_ids == (b * seq + idx)).astype(jnp.float32)    # (m, 1) one-hot
            rows.append(jnp.sum(x2 * sel, axis=0, keepdims=True))     # (1, W)
        g = jnp.concatenate(rows, axis=0)                             # (B, W)
        g = _ln(g, lnf_g[...], lnf_b[...])
        o_ref[...] = jnp.dot(g, proj[...],
                             preferred_element_type=jnp.float32).astype(o_ref.dtype)

    return kernel


def run_tower(gather_idx, x, tower, *, causal, n_valid):
    batch, seq, width = x.shape
    layers = tower[2].shape[0]
    embed = tower[-1].shape[-1]
    kernel = make_tower_kernel(seq=seq, width=width, heads=HEADS, layers=layers,
                               n_valid=n_valid, causal=causal)
    # Single program (no grid): every operand is mapped whole into VMEM exactly once;
    # the gather indices are scalars and live in SMEM.
    in_specs = ([pl.BlockSpec(memory_space=pltpu.MemorySpace.SMEM)]
                + [pl.BlockSpec(memory_space=pltpu.MemorySpace.VMEM)] * (1 + len(tower)))
    return pl.pallas_call(
        kernel,
        out_shape=jax.ShapeDtypeStruct((batch, embed), jnp.float32),
        in_specs=in_specs,
        out_specs=pl.BlockSpec(memory_space=pltpu.MemorySpace.VMEM),
    )(gather_idx, x, *tower)


# =====================================================================================
# CustomCLIP head kernel: Adapter MLP + ratio mix + L2 normalize + scaled logits
# =====================================================================================
def clip_head_kernel(img_ref, aw1_ref, aw2_ref, txt_ref, ls_ref, o_ref):
    img = img_ref[...].astype(jnp.float32)                               # (B, E)
    a = jnp.maximum(jnp.dot(img, aw1_ref[...], preferred_element_type=jnp.float32), 0.0)
    a = jnp.maximum(jnp.dot(a, aw2_ref[...], preferred_element_type=jnp.float32), 0.0)
    mixed = ADAPTER_RATIO * a + (1.0 - ADAPTER_RATIO) * img
    img_n = mixed * lax.rsqrt(jnp.sum(mixed * mixed, axis=-1, keepdims=True))
    txt = txt_ref[...].astype(jnp.float32)                               # (N, E)
    txt_n = txt * lax.rsqrt(jnp.sum(txt * txt, axis=-1, keepdims=True))
    logits = jnp.einsum('be,ne->bn', img_n, txt_n,
                        preferred_element_type=jnp.float32)              # (B, N)
    o_ref[...] = (jnp.exp(ls_ref[...]) * logits).astype(o_ref.dtype)


def run_clip_head(image_features, text_features, aw1, aw2, logit_scale):
    b = image_features.shape[0]
    n = text_features.shape[0]
    return pl.pallas_call(
        clip_head_kernel,
        out_shape=jax.ShapeDtypeStruct((b, n), jnp.float32),
        in_specs=[pl.BlockSpec(memory_space=pltpu.MemorySpace.VMEM)] * 5,
        out_specs=pl.BlockSpec(memory_space=pltpu.MemorySpace.VMEM),
    )(image_features, aw1, aw2, text_features, logit_scale)


# =====================================================================================
# Parameter init (deterministic, synthetic) + tokenizer / patchify glue
# =====================================================================================
def init_tower(key, layers, width, embed):
    k = jax.random.split(key, 5)

    def nrm(kk, shape, s=0.02):
        return jax.random.normal(kk, shape, dtype=jnp.float32) * s

    return [
        jnp.ones((layers, width), jnp.float32),          # ln1 gamma
        jnp.zeros((layers, width), jnp.float32),         # ln1 beta
        nrm(k[0], (layers, width, 3 * width)),           # W_qkv
        jnp.zeros((layers, 3 * width), jnp.float32),     # b_qkv
        nrm(k[1], (layers, width, width)),               # W_out
        jnp.zeros((layers, width), jnp.float32),         # b_out
        jnp.ones((layers, width), jnp.float32),          # ln2 gamma
        jnp.zeros((layers, width), jnp.float32),         # ln2 beta
        nrm(k[2], (layers, width, 4 * width)),           # mlp fc1
        jnp.zeros((layers, 4 * width), jnp.float32),     # b1
        nrm(k[3], (layers, 4 * width, width)),           # mlp fc2
        jnp.zeros((layers, width), jnp.float32),         # b2
        jnp.ones((1, width), jnp.float32),               # final LN gamma
        jnp.zeros((1, width), jnp.float32),              # final LN beta
        nrm(k[4], (width, embed)),                       # projection
    ]


def init_params(key):
    keys = jax.random.split(key, 9)

    def nrm(kk, shape, s=0.02):
        return jax.random.normal(kk, shape, dtype=jnp.float32) * s

    return dict(
        token_emb=nrm(keys[0], (VOCAB, WIDTH)),
        pos_emb_t=nrm(keys[1], (SEQ_T, WIDTH), 0.01),
        text_tower=init_tower(keys[2], LAYERS, WIDTH, EMBED),
        patch_emb=nrm(keys[3], (IMG_CH * PATCH * PATCH, WIDTH)),
        cls_emb=nrm(keys[4], (1, 1, WIDTH)),
        pos_emb_v=nrm(keys[5], (1 + NUM_PATCHES, WIDTH), 0.01),
        vis_tower=init_tower(keys[6], LAYERS, WIDTH, EMBED),
        # Adapter is 768->384->768 (no bias, ReLU) in the module; scaled to EMBED->EMBED//2->EMBED.
        adapter_w1=nrm(keys[7], (EMBED, EMBED // 2)),
        adapter_w2=nrm(keys[8], (EMBED // 2, EMBED)),
        logit_scale=jnp.full((1, 1), math.log(1.0 / 0.07), jnp.float32),
    )


def synthetic_tokenize(prompts):
    """Deterministic stand-in for clip.tokenize: SOT, char-hash ids, EOT (largest id), pad."""
    sot, eot = VOCAB - 2, VOCAB - 1
    toks = []
    for p in prompts:
        ids = [sot] + [(ord(c) % (VOCAB - 3)) + 1 for c in p][: SEQ_T - 2] + [eot]
        ids = ids + [0] * (SEQ_T - len(ids))
        toks.append(ids)
    return jnp.asarray(toks, jnp.int32)


def patchify(img, patch):
    b, c, hh, ww = img.shape
    gh, gw = hh // patch, ww // patch
    x = img.reshape(b, c, gh, patch, gw, patch)
    x = x.transpose(0, 2, 4, 1, 3, 5)
    return x.reshape(b, gh * gw, c * patch * patch)


# =====================================================================================
# CustomCLIP.forward
# =====================================================================================
def custom_clip_forward(image, classnames, p):
    # ---------- text tower (TextEncoder.forward) ----------
    prompts = [CUSTOM_TEMPLATE_BIGGAN.format(c.replace('_', ' ')) for c in classnames]
    tokens = synthetic_tokenize(prompts)                               # (N, S) int32
    eot_idx = jnp.argmax(tokens, axis=-1).astype(jnp.int32)            # EOT has the largest id
    xt = jnp.take(p['token_emb'], tokens, axis=0) + p['pos_emb_t'][None]   # glue: embedding lookup
    text_features = run_tower(eot_idx, xt, p['text_tower'],
                              causal=True, n_valid=SEQ_T)              # (N, EMBED)

    # ---------- image tower (clip_model.visual, small synthetic ViT) ----------
    b = image.shape[0]
    patches = patchify(image, PATCH)                                   # glue: conv1 as patch matmul
    pv = jnp.dot(patches, p['patch_emb'])                              # (B, 4, W)
    xv = jnp.concatenate([jnp.broadcast_to(p['cls_emb'], (b, 1, WIDTH)), pv], axis=1)
    xv = xv + p['pos_emb_v'][None]
    xv = jnp.pad(xv, ((0, 0), (0, SEQ_V - xv.shape[1]), (0, 0)))       # pad 5 -> 8; pad keys masked
    cls_idx = jnp.zeros((b,), jnp.int32)
    # TODO(synk): CLIP visual ln_pre is omitted in this small synthetic tower.
    image_features = run_tower(cls_idx, xv, p['vis_tower'],
                               causal=False, n_valid=1 + NUM_PATCHES)  # (B, EMBED)

    # ---------- adapter + 0.4/0.6 mix + L2 normalize + logit_scale.exp() * img @ txt.T ----------
    return run_clip_head(image_features, text_features,
                         p['adapter_w1'], p['adapter_w2'], p['logit_scale'])


if __name__ == "__main__":
    key = jax.random.PRNGKey(0)
    pkey, ikey = jax.random.split(key)
    params = init_params(pkey)
    image = jax.random.normal(ikey, (2, IMG_CH, IMG_SIZE, IMG_SIZE), dtype=jnp.float32)
    classnames = ["real", "fake"]

    logits = custom_clip_forward(image, classnames, params)
    logits = jax.block_until_ready(logits)

    assert logits.shape == (2, N_CLASSES)
    assert bool(jnp.all(jnp.isfinite(logits)))
    print("KERNEL_OK")
</pallas_src>

<mosaic_0001>
module attributes {stable_mosaic.version = 11 : i64} {
  func.func @kernel(%arg0: memref<2xi32, #tpu.memory_space<smem>>, %arg1: memref<2x8x32xf32, #tpu.memory_space<vmem>>, %arg2: memref<2x32xf32, #tpu.memory_space<vmem>>, %arg3: memref<2x32xf32, #tpu.memory_space<vmem>>, %arg4: memref<2x32x96xf32, #tpu.memory_space<vmem>>, %arg5: memref<2x96xf32, #tpu.memory_space<vmem>>, %arg6: memref<2x32x32xf32, #tpu.memory_space<vmem>>, %arg7: memref<2x32xf32, #tpu.memory_space<vmem>>, %arg8: memref<2x32xf32, #tpu.memory_space<vmem>>, %arg9: memref<2x32xf32, #tpu.memory_space<vmem>>, %arg10: memref<2x32x128xf32, #tpu.memory_space<vmem>>, %arg11: memref<2x128xf32, #tpu.memory_space<vmem>>, %arg12: memref<2x128x32xf32, #tpu.memory_space<vmem>>, %arg13: memref<2x32xf32, #tpu.memory_space<vmem>>, %arg14: memref<1x32xf32, #tpu.memory_space<vmem>>, %arg15: memref<1x32xf32, #tpu.memory_space<vmem>>, %arg16: memref<32x128xf32, #tpu.memory_space<vmem>>, %arg17: memref<2x128xf32, #tpu.memory_space<vmem>>) attributes {dimension_semantics = [], scalar_prefetch = 0 : i64, scratch_operands = 0 : i64, tpu.core_type = #tpu.core_type<tc>} {
    %c0 = arith.constant 0 : index
    %c0_0 = arith.constant 0 : index
    %c0_1 = arith.constant 0 : index
    %0 = vector.load %arg1[%c0, %c0_0, %c0_1] : memref<2x8x32xf32, #tpu.memory_space<vmem>>, vector<2x8x32xf32>
    %1 = vector.shape_cast %0 : vector<2x8x32xf32> to vector<16x32xf32>
    %2 = tpu.iota {dimensions = array<i32: 1>} : vector<8x8xi32>
    %c8_i32 = arith.constant 8 : i32
    %3 = vector.broadcast %c8_i32 : i32 to vector<8x8xi32>
    %4 = arith.cmpi slt, %2, %3 : vector<8x8xi32>
    %5 = tpu.iota {dimensions = array<i32: 0>} : vector<8x8xi32>
    %6 = arith.cmpi sge, %5, %2 : vector<8x8xi32>
    %7 = arith.andi %4, %6 : vector<8x8xi1>
    %8 = vector.shape_cast %7 : vector<8x8xi1> to vector<1x8x8xi1>
    %c0_2 = arith.constant 0 : index
    %c0_3 = arith.constant 0 : index
    %9 = vector.load %arg2[%c0_2, %c0_3] : memref<2x32xf32, #tpu.memory_space<vmem>>, vector<1x32xf32>
    %10 = vector.shape_cast %9 : vector<1x32xf32> to vector<32xf32>
    %c0_4 = arith.constant 0 : index
    %c0_5 = arith.constant 0 : index
    %11 = vector.load %arg3[%c0_4, %c0_5] : memref<2x32xf32, #tpu.memory_space<vmem>>, vector<1x32xf32>
    %12 = vector.shape_cast %11 : vector<1x32xf32> to vector<32xf32>
    %cst = arith.constant dense<0.000000e+00> : vector<16xf32>
    %13 = vector.multi_reduction <add>, %1, %cst [1] : vector<16x32xf32> to vector<16xf32>
    %14 = vector.shape_cast %13 : vector<16xf32> to vector<16x1xf32>
    %cst_6 = arith.constant 3.200000e+01 : f32
    %15 = vector.broadcast %cst_6 : f32 to vector<16x1xf32>
    %16 = arith.divf %14, %15 : vector<16x1xf32>
    %17 = vector.broadcast %16 : vector<16x1xf32> to vector<16x32xf32>
    %18 = arith.subf %1, %17 : vector<16x32xf32>
    %19 = arith.mulf %18, %18 : vector<16x32xf32>
    %cst_7 = arith.constant dense<0.000000e+00> : vector<16xf32>
    %20 = vector.multi_reduction <add>, %19, %cst_7 [1] : vector<16x32xf32> to vector<16xf32>
    %21 = vector.shape_cast %20 : vector<16xf32> to vector<16x1xf32>
    %cst_8 = arith.constant 3.200000e+01 : f32
    %22 = vector.broadcast %cst_8 : f32 to vector<16x1xf32>
    %23 = arith.divf %21, %22 : vector<16x1xf32>
    %24 = vector.broadcast %16 : vector<16x1xf32> to vector<16x32xf32>
    %25 = arith.subf %1, %24 : vector<16x32xf32>
    %cst_9 = arith.constant 9.99999974E-6 : f32
    %26 = vector.broadcast %cst_9 : f32 to vector<16x1xf32>
    %27 = arith.addf %23, %26 : vector<16x1xf32>
    %28 = math.rsqrt %27 : vector<16x1xf32>
    %29 = vector.broadcast %28 : vector<16x1xf32> to vector<16x32xf32>
    %30 = arith.mulf %25, %29 : vector<16x32xf32>
    %31 = vector.shape_cast %10 : vector<32xf32> to vector<1x32xf32>
    %32 = vector.broadcast %31 : vector<1x32xf32> to vector<16x32xf32>
    %33 = arith.mulf %30, %32 : vector<16x32xf32>
    %34 = vector.shape_cast %12 : vector<32xf32> to vector<1x32xf32>
    %35 = vector.broadcast %34 : vector<1x32xf32> to vector<16x32xf32>
    %36 = arith.addf %33, %35 : vector<16x32xf32>
    %c0_10 = arith.constant 0 : index
    %c0_11 = arith.constant 0 : index
    %c0_12 = arith.constant 0 : index
    %37 = vector.load %arg4[%c0_10, %c0_11, %c0_12] : memref<2x32x96xf32, #tpu.memory_space<vmem>>, vector<1x32x96xf32>
    %38 = vector.shape_cast %37 : vector<1x32x96xf32> to vector<32x96xf32>
    %cst_13 = arith.constant dense<0.000000e+00> : vector<16x96xf32>
    %39 = tpu.matmul %36, %38, %cst_13 {dimension_numbers = #tpu.dot_dimension_numbers<[1], [0], [0], [1], [0, 0, 1, 1], [], []>} : vector<16x32xf32>, vector<32x96xf32>, vector<16x96xf32> -> vector<16x96xf32>
    %c0_14 = arith.constant 0 : index
    %c0_15 = arith.constant 0 : index
    %40 = vector.load %arg5[%c0_14, %c0_15] : memref<2x96xf32, #tpu.memory_space<vmem>>, vector<1x96xf32>
    %41 = vector.shape_cast %40 : vector<1x96xf32> to vector<96xf32>
    %42 = vector.shape_cast %41 : vector<96xf32> to vector<1x96xf32>
    %43 = vector.broadcast %42 : vector<1x96xf32> to vector<16x96xf32>
    %44 = arith.addf %39, %43 : vector<16x96xf32>
    %45 = vector.extract_strided_slice %44 {offsets = [0, 0], sizes = [16, 32], strides = [1, 1]} : vector<16x96xf32> to vector<16x32xf32>
    %46 = vector.shape_cast %45 : vector<16x32xf32> to vector<2x8x32xf32>
    %47 = vector.extract_strided_slice %44 {offsets = [0, 32], sizes = [16, 32], strides = [1, 1]} : vector<16x96xf32> to vector<16x32xf32>
    %48 = vector.shape_cast %47 : vector<16x32xf32> to vector<2x8x32xf32>
    %49 = vector.extract_strided_slice %44 {offsets = [0, 64], sizes = [16, 32], strides = [1, 1]} : vector<16x96xf32> to vector<16x32xf32>
    %50 = vector.shape_cast %49 : vector<16x32xf32> to vector<2x8x32xf32>
    %c0_16 = arith.constant 0 : index
    %c0_17 = arith.constant 0 : index
    %c0_18 = arith.constant 0 : index
    %51 = vector.load %arg6[%c0_16, %c0_17, %c0_18] : memref<2x32x32xf32, #tpu.memory_space<vmem>>, vector<1x32x32xf32>
    %52 = vector.shape_cast %51 : vector<1x32x32xf32> to vector<32x32xf32>
    %cst_19 = arith.constant 0.000000e+00 : f32
    %53 = vector.broadcast %cst_19 : f32 to vector<16x32xf32>
    %54 = vector.extract_strided_slice %46 {offsets = [0, 0, 0], sizes = [2, 8, 8], strides = [1, 1, 1]} : vector<2x8x32xf32> to vector<2x8x8xf32>
    %55 = vector.extract_strided_slice %48 {offsets = [0, 0, 0], sizes = [2, 8, 8], strides = [1, 1, 1]} : vector<2x8x32xf32> to vector<2x8x8xf32>
    "tpu.trace_start"() <{level = 10 : i32, message = "bqd,bkd->bqk"}> : () -> ()
    %cst_20 = arith.constant dense<0.000000e+00> : vector<2x8x8xf32>
    %56 = tpu.matmul %54, %55, %cst_20 {dimension_numbers = #tpu.dot_dimension_numbers<[2], [2], [1], [1], [0, 0, 0, 1, 1, 1], [0], [0]>} : vector<2x8x8xf32>, vector<2x8x8xf32>, vector<2x8x8xf32> -> vector<2x8x8xf32>
    "tpu.trace_stop"() : () -> ()
    %cst_21 = arith.constant 0.353553385 : f32
    %57 = vector.broadcast %cst_21 : f32 to vector<2x8x8xf32>
    %58 = arith.mulf %56, %57 : vector<2x8x8xf32>
    %cst_22 = arith.constant -1.000000e+30 : f32
    %59 = vector.shape_cast %8 : vector<1x8x8xi1> to vector<1x8x8xi1>
    %60 = vector.broadcast %59 : vector<1x8x8xi1> to vector<2x8x8xi1>
    %61 = vector.broadcast %cst_22 : f32 to vector<2x8x8xf32>
    %62 = arith.select %60, %58, %61 : vector<2x8x8xi1>, vector<2x8x8xf32>
    %cst_23 = arith.constant dense<0xFF800000> : vector<2x8xf32>
    %63 = vector.multi_reduction <maximumf>, %62, %cst_23 [2] : vector<2x8x8xf32> to vector<2x8xf32>
    %64 = vector.shape_cast %63 : vector<2x8xf32> to vector<2x8x1xf32>
    %65 = vector.broadcast %64 : vector<2x8x1xf32> to vector<2x8x8xf32>
    %66 = arith.subf %62, %65 : vector<2x8x8xf32>
    %67 = math.exp %66 : vector<2x8x8xf32>
    %cst_24 = arith.constant dense<0.000000e+00> : vector<2x8xf32>
    %68 = vector.multi_reduction <add>, %67, %cst_24 [2] : vector<2x8x8xf32> to vector<2x8xf32>
    %69 = vector.shape_cast %68 : vector<2x8xf32> to vector<2x8x1xf32>
    %70 = tpu.reciprocal %69 {approx = true} : vector<2x8x1xf32> -> vector<2x8x1xf32>
    %71 = vector.broadcast %70 : vector<2x8x1xf32> to vector<2x8x8xf32>
    %72 = arith.mulf %67, %71 : vector<2x8x8xf32>
    %73 = vector.extract_strided_slice %50 {offsets = [0, 0, 0], sizes = [2, 8, 8], strides = [1, 1, 1]} : vector<2x8x32xf32> to vector<2x8x8xf32>
    "tpu.trace_start"() <{level = 10 : i32, message = "bqk,bkd->bqd"}> : () -> ()
    %cst_25 = arith.constant dense<0.000000e+00> : vector<2x8x8xf32>
    %74 = tpu.matmul %72, %73, %cst_25 {dimension_numbers = #tpu.dot_dimension_numbers<[2], [1], [1], [2], [0, 0, 0, 1, 1, 2], [0], [0]>} : vector<2x8x8xf32>, vector<2x8x8xf32>, vector<2x8x8xf32> -> vector<2x8x8xf32>
    "tpu.trace_stop"() : () -> ()
    %75 = vector.shape_cast %74 : vector<2x8x8xf32> to vector<16x8xf32>
    %76 = vector.extract_strided_slice %52 {offsets = [0, 0], sizes = [8, 32], strides = [1, 1]} : vector<32x32xf32> to vector<8x32xf32>
    %cst_26 = arith.constant dense<0.000000e+00> : vector<16x32xf32>
    %77 = tpu.matmul %75, %76, %cst_26 {dimension_numbers = #tpu.dot_dimension_numbers<[1], [0], [0], [1], [0, 0, 1, 1], [], []>} : vector<16x8xf32>, vector<8x32xf32>, vector<16x32xf32> -> vector<16x32xf32>
    %78 = arith.addf %53, %77 : vector<16x32xf32>
    %79 = vector.extract_strided_slice %46 {offsets = [0, 0, 8], sizes = [2, 8, 8], strides = [1, 1, 1]} : vector<2x8x32xf32> to vector<2x8x8xf32>
    %80 = vector.extract_strided_slice %48 {offsets = [0, 0, 8], sizes = [2, 8, 8], strides = [1, 1, 1]} : vector<2x8x32xf32> to vector<2x8x8xf32>
    "tpu.trace_start"() <{level = 10 : i32, message = "bqd,bkd->bqk"}> : () -> ()
    %cst_27 = arith.constant dense<0.000000e+00> : vector<2x8x8xf32>
    %81 = tpu.matmul %79, %80, %cst_27 {dimension_numbers = #tpu.dot_dimension_numbers<[2], [2], [1], [1], [0, 0, 0, 1, 1, 1], [0], [0]>} : vector<2x8x8xf32>, vector<2x8x8xf32>, vector<2x8x8xf32> -> vector<2x8x8xf32>
    "tpu.trace_stop"() : () -> ()
    %cst_28 = arith.constant 0.353553385 : f32
    %82 = vector.broadcast %cst_28 : f32 to vector<2x8x8xf32>
    %83 = arith.mulf %81, %82 : vector<2x8x8xf32>
    %cst_29 = arith.constant -1.000000e+30 : f32
    %84 = vector.shape_cast %8 : vector<1x8x8xi1> to vector<1x8x8xi1>
    %85 = vector.broadcast %84 : vector<1x8x8xi1> to vector<2x8x8xi1>
    %86 = vector.broadcast %cst_29 : f32 to vector<2x8x8xf32>
    %87 = arith.select %85, %83, %86 : vector<2x8x8xi1>, vector<2x8x8xf32>
    %cst_30 = arith.constant dense<0xFF800000> : vector<2x8xf32>
    %88 = vector.multi_reduction <maximumf>, %87, %cst_30 [2] : vector<2x8x8xf32> to vector<2x8xf32>
    %89 = vector.shape_cast %88 : vector<2x8xf32> to vector<2x8x1xf32>
    %90 = vector.broadcast %89 : vector<2x8x1xf32> to vector<2x8x8xf32>
    %91 = arith.subf %87, %90 : vector<2x8x8xf32>
    %92 = math.exp %91 : vector<2x8x8xf32>
    %cst_31 = arith.constant dense<0.000000e+00> : vector<2x8xf32>
    %93 = vector.multi_reduction <add>, %92, %cst_31 [2] : vector<2x8x8xf32> to vector<2x8xf32>
    %94 = vector.shape_cast %93 : vector<2x8xf32> to vector<2x8x1xf32>
    %95 = tpu.reciprocal %94 {approx = true} : vector<2x8x1xf32> -> vector<2x8x1xf32>
    %96 = vector.broadcast %95 : vector<2x8x1xf32> to vector<2x8x8xf32>
    %97 = arith.mulf %92, %96 : vector<2x8x8xf32>
    %98 = vector.extract_strided_slice %50 {offsets = [0, 0, 8], sizes = [2, 8, 8], strides = [1, 1, 1]} : vector<2x8x32xf32> to vector<2x8x8xf32>
    "tpu.trace_start"() <{level = 10 : i32, message = "bqk,bkd->bqd"}> : () -> ()
    %cst_32 = arith.constant dense<0.000000e+00> : vector<2x8x8xf32>
    %99 = tpu.matmul %97, %98, %cst_32 {dimension_numbers = #tpu.dot_dimension_numbers<[2], [1], [1], [2], [0, 0, 0, 1, 1, 2], [0], [0]>} : vector<2x8x8xf32>, vector<2x8x8xf32>, vector<2x8x8xf32> -> vector<2x8x8xf32>
    "tpu.trace_stop"() : () -> ()
    %100 = vector.shape_cast %99 : vector<2x8x8xf32> to vector<16x8xf32>
    %101 = vector.extract_strided_slice %52 {offsets = [8, 0], sizes = [8, 32], strides = [1, 1]} : vector<32x32xf32> to vector<8x32xf32>
    %cst_33 = arith.constant dense<0.000000e+00> : vector<16x32xf32>
    %102 = tpu.matmul %100, %101, %cst_33 {dimension_numbers = #tpu.dot_dimension_numbers<[1], [0], [0], [1], [0, 0, 1, 1], [], []>} : vector<16x8xf32>, vector<8x32xf32>, vector<16x32xf32> -> vector<16x32xf32>
    %103 = arith.addf %78, %102 : vector<16x32xf32>
    %104 = vector.extract_strided_slice %46 {offsets = [0, 0, 16], sizes = [2, 8, 8], strides = [1, 1, 1]} : vector<2x8x32xf32> to vector<2x8x8xf32>
    %105 = vector.extract_strided_slice %48 {offsets = [0, 0, 16], sizes = [2, 8, 8], strides = [1, 1, 1]} : vector<2x8x32xf32> to vector<2x8x8xf32>
    "tpu.trace_start"() <{level = 10 : i32, message = "bqd,bkd->bqk"}> : () -> ()
    %cst_34 = arith.constant dense<0.000000e+00> : vector<2x8x8xf32>
    %106 = tpu.matmul %104, %105, %cst_34 {dimension_numbers = #tpu.dot_dimension_numbers<[2], [2], [1], [1], [0, 0, 0, 1, 1, 1], [0], [0]>} : vector<2x8x8xf32>, vector<2x8x8xf32>, vector<2x8x8xf32> -> vector<2x8x8xf32>
    "tpu.trace_stop"() : () -> ()
    %cst_35 = arith.constant 0.353553385 : f32
    %107 = vector.broadcast %cst_35 : f32 to vector<2x8x8xf32>
    %108 = arith.mulf %106, %107 : vector<2x8x8xf32>
    %cst_36 = arith.constant -1.000000e+30 : f32
    %109 = vector.shape_cast %8 : vector<1x8x8xi1> to vector<1x8x8xi1>
    %110 = vector.broadcast %109 : vector<1x8x8xi1> to vector<2x8x8xi1>
    %111 = vector.broadcast %cst_36 : f32 to vector<2x8x8xf32>
    %112 = arith.select %110, %108, %111 : vector<2x8x8xi1>, vector<2x8x8xf32>
    %cst_37 = arith.constant dense<0xFF800000> : vector<2x8xf32>
    %113 = vector.multi_reduction <maximumf>, %112, %cst_37 [2] : vector<2x8x8xf32> to vector<2x8xf32>
    %114 = vector.shape_cast %113 : vector<2x8xf32> to vector<2x8x1xf32>
    %115 = vector.broadcast %114 : vector<2x8x1xf32> to vector<2x8x8xf32>
    %116 = arith.subf %112, %115 : vector<2x8x8xf32>
    %117 = math.exp %116 : vector<2x8x8xf32>
    %cst_38 = arith.constant dense<0.000000e+00> : vector<2x8xf32>
    %118 = vector.multi_reduction <add>, %117, %cst_38 [2] : vector<2x8x8xf32> to vector<2x8xf32>
    %119 = vector.shape_cast %118 : vector<2x8xf32> to vector<2x8x1xf32>
    %120 = tpu.reciprocal %119 {approx = true} : vector<2x8x1xf32> -> vector<2x8x1xf32>
    %121 = vector.broadcast %120 : vector<2x8x1xf32> to vector<2x8x8xf32>
    %122 = arith.mulf %117, %121 : vector<2x8x8xf32>
    %123 = vector.extract_strided_slice %50 {offsets = [0, 0, 16], sizes = [2, 8, 8], strides = [1, 1, 1]} : vector<2x8x32xf32> to vector<2x8x8xf32>
    "tpu.trace_start"() <{level = 10 : i32, message = "bqk,bkd->bqd"}> : () -> ()
    %cst_39 = arith.constant dense<0.000000e+00> : vector<2x8x8xf32>
    %124 = tpu.matmul %122, %123, %cst_39 {dimension_numbers = #tpu.dot_dimension_numbers<[2], [1], [1], [2], [0, 0, 0, 1, 1, 2], [0], [0]>} : vector<2x8x8xf32>, vector<2x8x8xf32>, vector<2x8x8xf32> -> vector<2x8x8xf32>
    "tpu.trace_stop"() : () -> ()
    %125 = vector.shape_cast %124 : vector<2x8x8xf32> to vector<16x8xf32>
    %126 = vector.extract_strided_slice %52 {offsets = [16, 0], sizes = [8, 32], strides = [1, 1]} : vector<32x32xf32> to vector<8x32xf32>
    %cst_40 = arith.constant dense<0.000000e+00> : vector<16x32xf32>
    %127 = tpu.matmul %125, %126, %cst_40 {dimension_numbers = #tpu.dot_dimension_numbers<[1], [0], [0], [1], [0, 0, 1, 1], [], []>} : vector<16x8xf32>, vector<8x32xf32>, vector<16x32xf32> -> vector<16x32xf32>
    %128 = arith.addf %103, %127 : vector<16x32xf32>
    %129 = vector.extract_strided_slice %46 {offsets = [0, 0, 24], sizes = [2, 8, 8], strides = [1, 1, 1]} : vector<2x8x32xf32> to vector<2x8x8xf32>
    %130 = vector.extract_strided_slice %48 {offsets = [0, 0, 24], sizes = [2, 8, 8], strides = [1, 1, 1]} : vector<2x8x32xf32> to vector<2x8x8xf32>
    "tpu.trace_start"() <{level = 10 : i32, message = "bqd,bkd->bqk"}> : () -> ()
    %cst_41 = arith.constant dense<0.000000e+00> : vector<2x8x8xf32>
    %131 = tpu.matmul %129, %130, %cst_41 {dimension_numbers = #tpu.dot_dimension_numbers<[2], [2], [1], [1], [0, 0, 0, 1, 1, 1], [0], [0]>} : vector<2x8x8xf32>, vector<2x8x8xf32>, vector<2x8x8xf32> -> vector<2x8x8xf32>
    "tpu.trace_stop"() : () -> ()
    %cst_42 = arith.constant 0.353553385 : f32
    %132 = vector.broadcast %cst_42 : f32 to vector<2x8x8xf32>
    %133 = arith.mulf %131, %132 : vector<2x8x8xf32>
    %cst_43 = arith.constant -1.000000e+30 : f32
    %134 = vector.shape_cast %8 : vector<1x8x8xi1> to vector<1x8x8xi1>
    %135 = vector.broadcast %134 : vector<1x8x8xi1> to vector<2x8x8xi1>
    %136 = vector.broadcast %cst_43 : f32 to vector<2x8x8xf32>
    %137 = arith.select %135, %133, %136 : vector<2x8x8xi1>, vector<2x8x8xf32>
    %cst_44 = arith.constant dense<0xFF800000> : vector<2x8xf32>
    %138 = vector.multi_reduction <maximumf>, %137, %cst_44 [2] : vector<2x8x8xf32> to vector<2x8xf32>
    %139 = vector.shape_cast %138 : vector<2x8xf32> to vector<2x8x1xf32>
    %140 = vector.broadcast %139 : vector<2x8x1xf32> to vector<2x8x8xf32>
    %141 = arith.subf %137, %140 : vector<2x8x8xf32>
    %142 = math.exp %141 : vector<2x8x8xf32>
    %cst_45 = arith.constant dense<0.000000e+00> : vector<2x8xf32>
    %143 = vector.multi_reduction <add>, %142, %cst_45 [2] : vector<2x8x8xf32> to vector<2x8xf32>
    %144 = vector.shape_cast %143 : vector<2x8xf32> to vector<2x8x1xf32>
    %145 = tpu.reciprocal %144 {approx = true} : vector<2x8x1xf32> -> vector<2x8x1xf32>
    %146 = vector.broadcast %145 : vector<2x8x1xf32> to vector<2x8x8xf32>
    %147 = arith.mulf %142, %146 : vector<2x8x8xf32>
    %148 = vector.extract_strided_slice %50 {offsets = [0, 0, 24], sizes = [2, 8, 8], strides = [1, 1, 1]} : vector<2x8x32xf32> to vector<2x8x8xf32>
    "tpu.trace_start"() <{level = 10 : i32, message = "bqk,bkd->bqd"}> : () -> ()
    %cst_46 = arith.constant dense<0.000000e+00> : vector<2x8x8xf32>
    %149 = tpu.matmul %147, %148, %cst_46 {dimension_numbers = #tpu.dot_dimension_numbers<[2], [1], [1], [2], [0, 0, 0, 1, 1, 2], [0], [0]>} : vector<2x8x8xf32>, vector<2x8x8xf32>, vector<2x8x8xf32> -> vector<2x8x8xf32>
    "tpu.trace_stop"() : () -> ()
    %150 = vector.shape_cast %149 : vector<2x8x8xf32> to vector<16x8xf32>
    %151 = vector.extract_strided_slice %52 {offsets = [24, 0], sizes = [8, 32], strides = [1, 1]} : vector<32x32xf32> to vector<8x32xf32>
    %cst_47 = arith.constant dense<0.000000e+00> : vector<16x32xf32>
    %152 = tpu.matmul %150, %151, %cst_47 {dimension_numbers = #tpu.dot_dimension_numbers<[1], [0], [0], [1], [0, 0, 1, 1], [], []>} : vector<16x8xf32>, vector<8x32xf32>, vector<16x32xf32> -> vector<16x32xf32>
    %153 = arith.addf %128, %152 : vector<16x32xf32>
    %154 = arith.addf %1, %153 : vector<16x32xf32>
    %c0_48 = arith.constant 0 : index
    %c0_49 = arith.constant 0 : index
    %155 = vector.load %arg7[%c0_48, %c0_49] : memref<2x32xf32, #tpu.memory_space<vmem>>, vector<1x32xf32>
    %156 = vector.shape_cast %155 : vector<1x32xf32> to vector<32xf32>
    %157 = vector.shape_cast %156 : vector<32xf32> to vector<1x32xf32>
    %158 = vector.broadcast %157 : vector<1x32xf32> to vector<16x32xf32>
    %159 = arith.addf %154, %158 : vector<16x32xf32>
    %c0_50 = arith.constant 0 : index
    %c0_51 = arith.constant 0 : index
    %160 = vector.load %arg8[%c0_50, %c0_51] : memref<2x32xf32, #tpu.memory_space<vmem>>, vector<1x32xf32>
    %161 = vector.shape_cast %160 : vector<1x32xf32> to vector<32xf32>
    %c0_52 = arith.constant 0 : index
    %c0_53 = arith.constant 0 : index
    %162 = vector.load %arg9[%c0_52, %c0_53] : memref<2x32xf32, #tpu.memory_space<vmem>>, vector<1x32xf32>
    %163 = vector.shape_cast %162 : vector<1x32xf32> to vector<32xf32>
    %cst_54 = arith.constant dense<0.000000e+00> : vector<16xf32>
    %164 = vector.multi_reduction <add>, %159, %cst_54 [1] : vector<16x32xf32> to vector<16xf32>
    %165 = vector.shape_cast %164 : vector<16xf32> to vector<16x1xf32>
    %cst_55 = arith.constant 3.200000e+01 : f32
    %166 = vector.broadcast %cst_55 : f32 to vector<16x1xf32>
    %167 = arith.divf %165, %166 : vector<16x1xf32>
    %168 = vector.broadcast %167 : vector<16x1xf32> to vector<16x32xf32>
    %169 = arith.subf %159, %168 : vector<16x32xf32>
    %170 = arith.mulf %169, %169 : vector<16x32xf32>
    %cst_56 = arith.constant dense<0.000000e+00> : vector<16xf32>
    %171 = vector.multi_reduction <add>, %170, %cst_56 [1] : vector<16x32xf32> to vector<16xf32>
    %172 = vector.shape_cast %171 : vector<16xf32> to vector<16x1xf32>
    %cst_57 = arith.constant 3.200000e+01 : f32
    %173 = vector.broadcast %cst_57 : f32 to vector<16x1xf32>
    %174 = arith.divf %172, %173 : vector<16x1xf32>
    %175 = vector.broadcast %167 : vector<16x1xf32> to vector<16x32xf32>
    %176 = arith.subf %159, %175 : vector<16x32xf32>
    %cst_58 = arith.constant 9.99999974E-6 : f32
    %177 = vector.broadcast %cst_58 : f32 to vector<16x1xf32>
    %178 = arith.addf %174, %177 : vector<16x1xf32>
    %179 = math.rsqrt %178 : vector<16x1xf32>
    %180 = vector.broadcast %179 : vector<16x1xf32> to vector<16x32xf32>
    %181 = arith.mulf %176, %180 : vector<16x32xf32>
    %182 = vector.shape_cast %161 : vector<32xf32> to vector<1x32xf32>
    %183 = vector.broadcast %182 : vector<1x32xf32> to vector<16x32xf32>
    %184 = arith.mulf %181, %183 : vector<16x32xf32>
    %185 = vector.shape_cast %163 : vector<32xf32> to vector<1x32xf32>
    %186 = vector.broadcast %185 : vector<1x32xf32> to vector<16x32xf32>
    %187 = arith.addf %184, %186 : vector<16x32xf32>
    %c0_59 = arith.constant 0 : index
    %c0_60 = arith.constant 0 : index
    %c0_61 = arith.constant 0 : index
    %188 = vector.load %arg10[%c0_59, %c0_60, %c0_61] : memref<2x32x128xf32, #tpu.memory_space<vmem>>, vector<1x32x128xf32>
    %189 = vector.shape_cast %188 : vector<1x32x128xf32> to vector<32x128xf32>
    %cst_62 = arith.constant dense<0.000000e+00> : vector<16x128xf32>
    %190 = tpu.matmul %187, %189, %cst_62 {dimension_numbers = #tpu.dot_dimension_numbers<[1], [0], [0], [1], [0, 0, 1, 1], [], []>} : vector<16x32xf32>, vector<32x128xf32>, vector<16x128xf32> -> vector<16x128xf32>
    %c0_63 = arith.constant 0 : index
    %c0_64 = arith.constant 0 : index
    %191 = vector.load %arg11[%c0_63, %c0_64] : memref<2x128xf32, #tpu.memory_space<vmem>>, vector<1x128xf32>
    %192 = vector.shape_cast %191 : vector<1x128xf32> to vector<128xf32>
    %193 = vector.shape_cast %192 : vector<128xf32> to vector<1x128xf32>
    %194 = vector.broadcast %193 : vector<1x128xf32> to vector<16x128xf32>
    %195 = arith.addf %190, %194 : vector<16x128xf32>
    %cst_65 = arith.constant 1.702000e+00 : f32
    %196 = vector.broadcast %cst_65 : f32 to vector<16x128xf32>
    %197 = arith.mulf %196, %195 : vector<16x128xf32>
    %198 = arith.negf %197 : vector<16x128xf32>
    %199 = math.exp %198 : vector<16x128xf32>
    %cst_66 = arith.constant 1.000000e+00 : f32
    %200 = vector.broadcast %cst_66 : f32 to vector<16x128xf32>
    %201 = arith.addf %200, %199 : vector<16x128xf32>
    %202 = arith.divf %200, %201 : vector<16x128xf32>
    %203 = arith.mulf %195, %202 : vector<16x128xf32>
    %c0_67 = arith.constant 0 : index
    %c0_68 = arith.constant 0 : index
    %c0_69 = arith.constant 0 : index
    %204 = vector.load %arg12[%c0_67, %c0_68, %c0_69] : memref<2x128x32xf32, #tpu.memory_space<vmem>>, vector<1x128x32xf32>
    %205 = vector.shape_cast %204 : vector<1x128x32xf32> to vector<128x32xf32>
    %cst_70 = arith.constant dense<0.000000e+00> : vector<16x32xf32>
    %206 = tpu.matmul %203, %205, %cst_70 {dimension_numbers = #tpu.dot_dimension_numbers<[1], [0], [0], [1], [0, 0, 1, 1], [], []>} : vector<16x128xf32>, vector<128x32xf32>, vector<16x32xf32> -> vector<16x32xf32>
    %c0_71 = arith.constant 0 : index
    %c0_72 = arith.constant 0 : index
    %207 = vector.load %arg13[%c0_71, %c0_72] : memref<2x32xf32, #tpu.memory_space<vmem>>, vector<1x32xf32>
    %208 = vector.shape_cast %207 : vector<1x32xf32> to vector<32xf32>
    %209 = vector.shape_cast %208 : vector<32xf32> to vector<1x32xf32>
    %210 = vector.broadcast %209 : vector<1x32xf32> to vector<16x32xf32>
    %211 = arith.addf %206, %210 : vector<16x32xf32>
    %212 = arith.addf %159, %211 : vector<16x32xf32>
    %c1 = arith.constant 1 : index
    %c0_73 = arith.constant 0 : index
    %213 = vector.load %arg2[%c1, %c0_73] : memref<2x32xf32, #tpu.memory_space<vmem>>, vector<1x32xf32>
    %214 = vector.shape_cast %213 : vector<1x32xf32> to vector<32xf32>
    %c1_74 = arith.constant 1 : index
    %c0_75 = arith.constant 0 : index
    %215 = vector.load %arg3[%c1_74, %c0_75] : memref<2x32xf32, #tpu.memory_space<vmem>>, vector<1x32xf32>
    %216 = vector.shape_cast %215 : vector<1x32xf32> to vector<32xf32>
    %cst_76 = arith.constant dense<0.000000e+00> : vector<16xf32>
    %217 = vector.multi_reduction <add>, %212, %cst_76 [1] : vector<16x32xf32> to vector<16xf32>
    %218 = vector.shape_cast %217 : vector<16xf32> to vector<16x1xf32>
    %cst_77 = arith.constant 3.200000e+01 : f32
    %219 = vector.broadcast %cst_77 : f32 to vector<16x1xf32>
    %220 = arith.divf %218, %219 : vector<16x1xf32>
    %221 = vector.broadcast %220 : vector<16x1xf32> to vector<16x32xf32>
    %222 = arith.subf %212, %221 : vector<16x32xf32>
    %223 = arith.mulf %222, %222 : vector<16x32xf32>
    %cst_78 = arith.constant dense<0.000000e+00> : vector<16xf32>
    %224 = vector.multi_reduction <add>, %223, %cst_78 [1] : vector<16x32xf32> to vector<16xf32>
    %225 = vector.shape_cast %224 : vector<16xf32> to vector<16x1xf32>
    %cst_79 = arith.constant 3.200000e+01 : f32
    %226 = vector.broadcast %cst_79 : f32 to vector<16x1xf32>
    %227 = arith.divf %225, %226 : vector<16x1xf32>
    %228 = vector.broadcast %220 : vector<16x1xf32> to vector<16x32xf32>
    %229 = arith.subf %212, %228 : vector<16x32xf32>
    %cst_80 = arith.constant 9.99999974E-6 : f32
    %230 = vector.broadcast %cst_80 : f32 to vector<16x1xf32>
    %231 = arith.addf %227, %230 : vector<16x1xf32>
    %232 = math.rsqrt %231 : vector<16x1xf32>
    %233 = vector.broadcast %232 : vector<16x1xf32> to vector<16x32xf32>
    %234 = arith.mulf %229, %233 : vector<16x32xf32>
    %235 = vector.shape_cast %214 : vector<32xf32> to vector<1x32xf32>
    %236 = vector.broadcast %235 : vector<1x32xf32> to vector<16x32xf32>
    %237 = arith.mulf %234, %236 : vector<16x32xf32>
    %238 = vector.shape_cast %216 : vector<32xf32> to vector<1x32xf32>
    %239 = vector.broadcast %238 : vector<1x32xf32> to vector<16x32xf32>
    %240 = arith.addf %237, %239 : vector<16x32xf32>
    %c1_81 = arith.constant 1 : index
    %c0_82 = arith.constant 0 : index
    %c0_83 = arith.constant 0 : index
    %241 = vector.load %arg4[%c1_81, %c0_82, %c0_83] : memref<2x32x96xf32, #tpu.memory_space<vmem>>, vector<1x32x96xf32>
    %242 = vector.shape_cast %241 : vector<1x32x96xf32> to vector<32x96xf32>
    %cst_84 = arith.constant dense<0.000000e+00> : vector<16x96xf32>
    %243 = tpu.matmul %240, %242, %cst_84 {dimension_numbers = #tpu.dot_dimension_numbers<[1], [0], [0], [1], [0, 0, 1, 1], [], []>} : vector<16x32xf32>, vector<32x96xf32>, vector<16x96xf32> -> vector<16x96xf32>
    %c1_85 = arith.constant 1 : index
    %c0_86 = arith.constant 0 : index
    %244 = vector.load %arg5[%c1_85, %c0_86] : memref<2x96xf32, #tpu.memory_space<vmem>>, vector<1x96xf32>
    %245 = vector.shape_cast %244 : vector<1x96xf32> to vector<96xf32>
    %246 = vector.shape_cast %245 : vector<96xf32> to vector<1x96xf32>
    %247 = vector.broadcast %246 : vector<1x96xf32> to vector<16x96xf32>
    %248 = arith.addf %243, %247 : vector<16x96xf32>
    %249 = vector.extract_strided_slice %248 {offsets = [0, 0], sizes = [16, 32], strides = [1, 1]} : vector<16x96xf32> to vector<16x32xf32>
    %250 = vector.shape_cast %249 : vector<16x32xf32> to vector<2x8x32xf32>
    %251 = vector.extract_strided_slice %248 {offsets = [0, 32], sizes = [16, 32], strides = [1, 1]} : vector<16x96xf32> to vector<16x32xf32>
    %252 = vector.shape_cast %251 : vector<16x32xf32> to vector<2x8x32xf32>
    %253 = vector.extract_strided_slice %248 {offsets = [0, 64], sizes = [16, 32], strides = [1, 1]} : vector<16x96xf32> to vector<16x32xf32>
    %254 = vector.shape_cast %253 : vector<16x32xf32> to vector<2x8x32xf32>
    %c1_87 = arith.constant 1 : index
    %c0_88 = arith.constant 0 : index
    %c0_89 = arith.constant 0 : index
    %255 = vector.load %arg6[%c1_87, %c0_88, %c0_89] : memref<2x32x32xf32, #tpu.memory_space<vmem>>, vector<1x32x32xf32>
    %256 = vector.shape_cast %255 : vector<1x32x32xf32> to vector<32x32xf32>
    %cst_90 = arith.constant 0.000000e+00 : f32
    %257 = vector.broadcast %cst_90 : f32 to vector<16x32xf32>
    %258 = vector.extract_strided_slice %250 {offsets = [0, 0, 0], sizes = [2, 8, 8], strides = [1, 1, 1]} : vector<2x8x32xf32> to vector<2x8x8xf32>
    %259 = vector.extract_strided_slice %252 {offsets = [0, 0, 0], sizes = [2, 8, 8], strides = [1, 1, 1]} : vector<2x8x32xf32> to vector<2x8x8xf32>
    "tpu.trace_start"() <{level = 10 : i32, message = "bqd,bkd->bqk"}> : () -> ()
    %cst_91 = arith.constant dense<0.000000e+00> : vector<2x8x8xf32>
    %260 = tpu.matmul %258, %259, %cst_91 {dimension_numbers = #tpu.dot_dimension_numbers<[2], [2], [1], [1], [0, 0, 0, 1, 1, 1], [0], [0]>} : vector<2x8x8xf32>, vector<2x8x8xf32>, vector<2x8x8xf32> -> vector<2x8x8xf32>
    "tpu.trace_stop"() : () -> ()
    %cst_92 = arith.constant 0.353553385 : f32
    %261 = vector.broadcast %cst_92 : f32 to vector<2x8x8xf32>
    %262 = arith.mulf %260, %261 : vector<2x8x8xf32>
    %cst_93 = arith.constant -1.000000e+30 : f32
    %263 = vector.shape_cast %8 : vector<1x8x8xi1> to vector<1x8x8xi1>
    %264 = vector.broadcast %263 : vector<1x8x8xi1> to vector<2x8x8xi1>
    %265 = vector.broadcast %cst_93 : f32 to vector<2x8x8xf32>
    %266 = arith.select %264, %262, %265 : vector<2x8x8xi1>, vector<2x8x8xf32>
    %cst_94 = arith.constant dense<0xFF800000> : vector<2x8xf32>
    %267 = vector.multi_reduction <maximumf>, %266, %cst_94 [2] : vector<2x8x8xf32> to vector<2x8xf32>
    %268 = vector.shape_cast %267 : vector<2x8xf32> to vector<2x8x1xf32>
    %269 = vector.broadcast %268 : vector<2x8x1xf32> to vector<2x8x8xf32>
    %270 = arith.subf %266, %269 : vector<2x8x8xf32>
    %271 = math.exp %270 : vector<2x8x8xf32>
    %cst_95 = arith.constant dense<0.000000e+00> : vector<2x8xf32>
    %272 = vector.multi_reduction <add>, %271, %cst_95 [2] : vector<2x8x8xf32> to vector<2x8xf32>
    %273 = vector.shape_cast %272 : vector<2x8xf32> to vector<2x8x1xf32>
    %274 = tpu.reciprocal %273 {approx = true} : vector<2x8x1xf32> -> vector<2x8x1xf32>
    %275 = vector.broadcast %274 : vector<2x8x1xf32> to vector<2x8x8xf32>
    %276 = arith.mulf %271, %275 : vector<2x8x8xf32>
    %277 = vector.extract_strided_slice %254 {offsets = [0, 0, 0], sizes = [2, 8, 8], strides = [1, 1, 1]} : vector<2x8x32xf32> to vector<2x8x8xf32>
    "tpu.trace_start"() <{level = 10 : i32, message = "bqk,bkd->bqd"}> : () -> ()
    %cst_96 = arith.constant dense<0.000000e+00> : vector<2x8x8xf32>
    %278 = tpu.matmul %276, %277, %cst_96 {dimension_numbers = #tpu.dot_dimension_numbers<[2], [1], [1], [2], [0, 0, 0, 1, 1, 2], [0], [0]>} : vector<2x8x8xf32>, vector<2x8x8xf32>, vector<2x8x8xf32> -> vector<2x8x8xf32>
    "tpu.trace_stop"() : () -> ()
    %279 = vector.shape_cast %278 : vector<2x8x8xf32> to vector<16x8xf32>
    %280 = vector.extract_strided_slice %256 {offsets = [0, 0], sizes = [8, 32], strides = [1, 1]} : vector<32x32xf32> to vector<8x32xf32>
    %cst_97 = arith.constant dense<0.000000e+00> : vector<16x32xf32>
    %281 = tpu.matmul %279, %280, %cst_97 {dimension_numbers = #tpu.dot_dimension_numbers<[1], [0], [0], [1], [0, 0, 1, 1], [], []>} : vector<16x8xf32>, vector<8x32xf32>, vector<16x32xf32> -> vector<16x32xf32>
    %282 = arith.addf %257, %281 : vector<16x32xf32>
    %283 = vector.extract_strided_slice %250 {offsets = [0, 0, 8], sizes = [2, 8, 8], strides = [1, 1, 1]} : vector<2x8x32xf32> to vector<2x8x8xf32>
    %284 = vector.extract_strided_slice %252 {offsets = [0, 0, 8], sizes = [2, 8, 8], strides = [1, 1, 1]} : vector<2x8x32xf32> to vector<2x8x8xf32>
    "tpu.trace_start"() <{level = 10 : i32, message = "bqd,bkd->bqk"}> : () -> ()
    %cst_98 = arith.constant dense<0.000000e+00> : vector<2x8x8xf32>
    %285 = tpu.matmul %283, %284, %cst_98 {dimension_numbers = #tpu.dot_dimension_numbers<[2], [2], [1], [1], [0, 0, 0, 1, 1, 1], [0], [0]>} : vector<2x8x8xf32>, vector<2x8x8xf32>, vector<2x8x8xf32> -> vector<2x8x8xf32>
    "tpu.trace_stop"() : () -> ()
    %cst_99 = arith.constant 0.353553385 : f32
    %286 = vector.broadcast %cst_99 : f32 to vector<2x8x8xf32>
    %287 = arith.mulf %285, %286 : vector<2x8x8xf32>
    %cst_100 = arith.constant -1.000000e+30 : f32
    %288 = vector.shape_cast %8 : vector<1x8x8xi1> to vector<1x8x8xi1>
    %289 = vector.broadcast %288 : vector<1x8x8xi1> to vector<2x8x8xi1>
    %290 = vector.broadcast %cst_100 : f32 to vector<2x8x8xf32>
    %291 = arith.select %289, %287, %290 : vector<2x8x8xi1>, vector<2x8x8xf32>
    %cst_101 = arith.constant dense<0xFF800000> : vector<2x8xf32>
    %292 = vector.multi_reduction <maximumf>, %291, %cst_101 [2] : vector<2x8x8xf32> to vector<2x8xf32>
    %293 = vector.shape_cast %292 : vector<2x8xf32> to vector<2x8x1xf32>
    %294 = vector.broadcast %293 : vector<2x8x1xf32> to vector<2x8x8xf32>
    %295 = arith.subf %291, %294 : vector<2x8x8xf32>
    %296 = math.exp %295 : vector<2x8x8xf32>
    %cst_102 = arith.constant dense<0.000000e+00> : vector<2x8xf32>
    %297 = vector.multi_reduction <add>, %296, %cst_102 [2] : vector<2x8x8xf32> to vector<2x8xf32>
    %298 = vector.shape_cast %297 : vector<2x8xf32> to vector<2x8x1xf32>
    %299 = tpu.reciprocal %298 {approx = true} : vector<2x8x1xf32> -> vector<2x8x1xf32>
    %300 = vector.broadcast %299 : vector<2x8x1xf32> to vector<2x8x8xf32>
    %301 = arith.mulf %296, %300 : vector<2x8x8xf32>
    %302 = vector.extract_strided_slice %254 {offsets = [0, 0, 8], sizes = [2, 8, 8], strides = [1, 1, 1]} : vector<2x8x32xf32> to vector<2x8x8xf32>
    "tpu.trace_start"() <{level = 10 : i32, message = "bqk,bkd->bqd"}> : () -> ()
    %cst_103 = arith.constant dense<0.000000e+00> : vector<2x8x8xf32>
    %303 = tpu.matmul %301, %302, %cst_103 {dimension_numbers = #tpu.dot_dimension_numbers<[2], [1], [1], [2], [0, 0, 0, 1, 1, 2], [0], [0]>} : vector<2x8x8xf32>, vector<2x8x8xf32>, vector<2x8x8xf32> -> vector<2x8x8xf32>
    "tpu.trace_stop"() : () -> ()
    %304 = vector.shape_cast %303 : vector<2x8x8xf32> to vector<16x8xf32>
    %305 = vector.extract_strided_slice %256 {offsets = [8, 0], sizes = [8, 32], strides = [1, 1]} : vector<32x32xf32> to vector<8x32xf32>
    %cst_104 = arith.constant dense<0.000000e+00> : vector<16x32xf32>
    %306 = tpu.matmul %304, %305, %cst_104 {dimension_numbers = #tpu.dot_dimension_numbers<[1], [0], [0], [1], [0, 0, 1, 1], [], []>} : vector<16x8xf32>, vector<8x32xf32>, vector<16x32xf32> -> vector<16x32xf32>
    %307 = arith.addf %282, %306 : vector<16x32xf32>
    %308 = vector.extract_strided_slice %250 {offsets = [0, 0, 16], sizes = [2, 8, 8], strides = [1, 1, 1]} : vector<2x8x32xf32> to vector<2x8x8xf32>
    %309 = vector.extract_strided_slice %252 {offsets = [0, 0, 16], sizes = [2, 8, 8], strides = [1, 1, 1]} : vector<2x8x32xf32> to vector<2x8x8xf32>
    "tpu.trace_start"() <{level = 10 : i32, message = "bqd,bkd->bqk"}> : () -> ()
    %cst_105 = arith.constant dense<0.000000e+00> : vector<2x8x8xf32>
    %310 = tpu.matmul %308, %309, %cst_105 {dimension_numbers = #tpu.dot_dimension_numbers<[2], [2], [1], [1], [0, 0, 0, 1, 1, 1], [0], [0]>} : vector<2x8x8xf32>, vector<2x8x8xf32>, vector<2x8x8xf32> -> vector<2x8x8xf32>
    "tpu.trace_stop"() : () -> ()
    %cst_106 = arith.constant 0.353553385 : f32
    %311 = vector.broadcast %cst_106 : f32 to vector<2x8x8xf32>
    %312 = arith.mulf %310, %311 : vector<2x8x8xf32>
    %cst_107 = arith.constant -1.000000e+30 : f32
    %313 = vector.shape_cast %8 : vector<1x8x8xi1> to vector<1x8x8xi1>
    %314 = vector.broadcast %313 : vector<1x8x8xi1> to vector<2x8x8xi1>
    %315 = vector.broadcast %cst_107 : f32 to vector<2x8x8xf32>
    %316 = arith.select %314, %312, %315 : vector<2x8x8xi1>, vector<2x8x8xf32>
    %cst_108 = arith.constant dense<0xFF800000> : vector<2x8xf32>
    %317 = vector.multi_reduction <maximumf>, %316, %cst_108 [2] : vector<2x8x8xf32> to vector<2x8xf32>
    %318 = vector.shape_cast %317 : vector<2x8xf32> to vector<2x8x1xf32>
    %319 = vector.broadcast %318 : vector<2x8x1xf32> to vector<2x8x8xf32>
    %320 = arith.subf %316, %319 : vector<2x8x8xf32>
    %321 = math.exp %320 : vector<2x8x8xf32>
    %cst_109 = arith.constant dense<0.000000e+00> : vector<2x8xf32>
    %322 = vector.multi_reduction <add>, %321, %cst_109 [2] : vector<2x8x8xf32> to vector<2x8xf32>
    %323 = vector.shape_cast %322 : vector<2x8xf32> to vector<2x8x1xf32>
    %324 = tpu.reciprocal %323 {approx = true} : vector<2x8x1xf32> -> vector<2x8x1xf32>
    %325 = vector.broadcast %324 : vector<2x8x1xf32> to vector<2x8x8xf32>
    %326 = arith.mulf %321, %325 : vector<2x8x8xf32>
    %327 = vector.extract_strided_slice %254 {offsets = [0, 0, 16], sizes = [2, 8, 8], strides = [1, 1, 1]} : vector<2x8x32xf32> to vector<2x8x8xf32>
    "tpu.trace_start"() <{level = 10 : i32, message = "bqk,bkd->bqd"}> : () -> ()
    %cst_110 = arith.constant dense<0.000000e+00> : vector<2x8x8xf32>
    %328 = tpu.matmul %326, %327, %cst_110 {dimension_numbers = #tpu.dot_dimension_numbers<[2], [1], [1], [2], [0, 0, 0, 1, 1, 2], [0], [0]>} : vector<2x8x8xf32>, vector<2x8x8xf32>, vector<2x8x8xf32> -> vector<2x8x8xf32>
    "tpu.trace_stop"() : () -> ()
    %329 = vector.shape_cast %328 : vector<2x8x8xf32> to vector<16x8xf32>
    %330 = vector.extract_strided_slice %256 {offsets = [16, 0], sizes = [8, 32], strides = [1, 1]} : vector<32x32xf32> to vector<8x32xf32>
    %cst_111 = arith.constant dense<0.000000e+00> : vector<16x32xf32>
    %331 = tpu.matmul %329, %330, %cst_111 {dimension_numbers = #tpu.dot_dimension_numbers<[1], [0], [0], [1], [0, 0, 1, 1], [], []>} : vector<16x8xf32>, vector<8x32xf32>, vector<16x32xf32> -> vector<16x32xf32>
    %332 = arith.addf %307, %331 : vector<16x32xf32>
    %333 = vector.extract_strided_slice %250 {offsets = [0, 0, 24], sizes = [2, 8, 8], strides = [1, 1, 1]} : vector<2x8x32xf32> to vector<2x8x8xf32>
    %334 = vector.extract_strided_slice %252 {offsets = [0, 0, 24], sizes = [2, 8, 8], strides = [1, 1, 1]} : vector<2x8x32xf32> to vector<2x8x8xf32>
    "tpu.trace_start"() <{level = 10 : i32, message = "bqd,bkd->bqk"}> : () -> ()
    %cst_112 = arith.constant dense<0.000000e+00> : vector<2x8x8xf32>
    %335 = tpu.matmul %333, %334, %cst_112 {dimension_numbers = #tpu.dot_dimension_numbers<[2], [2], [1], [1], [0, 0, 0, 1, 1, 1], [0], [0]>} : vector<2x8x8xf32>, vector<2x8x8xf32>, vector<2x8x8xf32> -> vector<2x8x8xf32>
    "tpu.trace_stop"() : () -> ()
    %cst_113 = arith.constant 0.353553385 : f32
    %336 = vector.broadcast %cst_113 : f32 to vector<2x8x8xf32>
    %337 = arith.mulf %335, %336 : vector<2x8x8xf32>
    %cst_114 = arith.constant -1.000000e+30 : f32
    %338 = vector.shape_cast %8 : vector<1x8x8xi1> to vector<1x8x8xi1>
    %339 = vector.broadcast %338 : vector<1x8x8xi1> to vector<2x8x8xi1>
    %340 = vector.broadcast %cst_114 : f32 to vector<2x8x8xf32>
    %341 = arith.select %339, %337, %340 : vector<2x8x8xi1>, vector<2x8x8xf32>
    %cst_115 = arith.constant dense<0xFF800000> : vector<2x8xf32>
    %342 = vector.multi_reduction <maximumf>, %341, %cst_115 [2] : vector<2x8x8xf32> to vector<2x8xf32>
    %343 = vector.shape_cast %342 : vector<2x8xf32> to vector<2x8x1xf32>
    %344 = vector.broadcast %343 : vector<2x8x1xf32> to vector<2x8x8xf32>
    %345 = arith.subf %341, %344 : vector<2x8x8xf32>
    %346 = math.exp %345 : vector<2x8x8xf32>
    %cst_116 = arith.constant dense<0.000000e+00> : vector<2x8xf32>
    %347 = vector.multi_reduction <add>, %346, %cst_116 [2] : vector<2x8x8xf32> to vector<2x8xf32>
    %348 = vector.shape_cast %347 : vector<2x8xf32> to vector<2x8x1xf32>
    %349 = tpu.reciprocal %348 {approx = true} : vector<2x8x1xf32> -> vector<2x8x1xf32>
    %350 = vector.broadcast %349 : vector<2x8x1xf32> to vector<2x8x8xf32>
    %351 = arith.mulf %346, %350 : vector<2x8x8xf32>
    %352 = vector.extract_strided_slice %254 {offsets = [0, 0, 24], sizes = [2, 8, 8], strides = [1, 1, 1]} : vector<2x8x32xf32> to vector<2x8x8xf32>
    "tpu.trace_start"() <{level = 10 : i32, message = "bqk,bkd->bqd"}> : () -> ()
    %cst_117 = arith.constant dense<0.000000e+00> : vector<2x8x8xf32>
    %353 = tpu.matmul %351, %352, %cst_117 {dimension_numbers = #tpu.dot_dimension_numbers<[2], [1], [1], [2], [0, 0, 0, 1, 1, 2], [0], [0]>} : vector<2x8x8xf32>, vector<2x8x8xf32>, vector<2x8x8xf32> -> vector<2x8x8xf32>
    "tpu.trace_stop"() : () -> ()
    %354 = vector.shape_cast %353 : vector<2x8x8xf32> to vector<16x8xf32>
    %355 = vector.extract_strided_slice %256 {offsets = [24, 0], sizes = [8, 32], strides = [1, 1]} : vector<32x32xf32> to vector<8x32xf32>
    %cst_118 = arith.constant dense<0.000000e+00> : vector<16x32xf32>
    %356 = tpu.matmul %354, %355, %cst_118 {dimension_numbers = #tpu.dot_dimension_numbers<[1], [0], [0], [1], [0, 0, 1, 1], [], []>} : vector<16x8xf32>, vector<8x32xf32>, vector<16x32xf32> -> vector<16x32xf32>
    %357 = arith.addf %332, %356 : vector<16x32xf32>
    %358 = arith.addf %212, %357 : vector<16x32xf32>
    %c1_119 = arith.constant 1 : index
    %c0_120 = arith.constant 0 : index
    %359 = vector.load %arg7[%c1_119, %c0_120] : memref<2x32xf32, #tpu.memory_space<vmem>>, vector<1x32xf32>
    %360 = vector.shape_cast %359 : vector<1x32xf32> to vector<32xf32>
    %361 = vector.shape_cast %360 : vector<32xf32> to vector<1x32xf32>
    %362 = vector.broadcast %361 : vector<1x32xf32> to vector<16x32xf32>
    %363 = arith.addf %358, %362 : vector<16x32xf32>
    %c1_121 = arith.constant 1 : index
    %c0_122 = arith.constant 0 : index
    %364 = vector.load %arg8[%c1_121, %c0_122] : memref<2x32xf32, #tpu.memory_space<vmem>>, vector<1x32xf32>
    %365 = vector.shape_cast %364 : vector<1x32xf32> to vector<32xf32>
    %c1_123 = arith.constant 1 : index
    %c0_124 = arith.constant 0 : index
    %366 = vector.load %arg9[%c1_123, %c0_124] : memref<2x32xf32, #tpu.memory_space<vmem>>, vector<1x32xf32>
    %367 = vector.shape_cast %366 : vector<1x32xf32> to vector<32xf32>
    %cst_125 = arith.constant dense<0.000000e+00> : vector<16xf32>
    %368 = vector.multi_reduction <add>, %363, %cst_125 [1] : vector<16x32xf32> to vector<16xf32>
    %369 = vector.shape_cast %368 : vector<16xf32> to vector<16x1xf32>
    %cst_126 = arith.constant 3.200000e+01 : f32
    %370 = vector.broadcast %cst_126 : f32 to vector<16x1xf32>
    %371 = arith.divf %369, %370 : vector<16x1xf32>
    %372 = vector.broadcast %371 : vector<16x1xf32> to vector<16x32xf32>
    %373 = arith.subf %363, %372 : vector<16x32xf32>
    %374 = arith.mulf %373, %373 : vector<16x32xf32>
    %cst_127 = arith.constant dense<0.000000e+00> : vector<16xf32>
    %375 = vector.multi_reduction <add>, %374, %cst_127 [1] : vector<16x32xf32> to vector<16xf32>
    %376 = vector.shape_cast %375 : vector<16xf32> to vector<16x1xf32>
    %cst_128 = arith.constant 3.200000e+01 : f32
    %377 = vector.broadcast %cst_128 : f32 to vector<16x1xf32>
    %378 = arith.divf %376, %377 : vector<16x1xf32>
    %379 = vector.broadcast %371 : vector<16x1xf32> to vector<16x32xf32>
    %380 = arith.subf %363, %379 : vector<16x32xf32>
    %cst_129 = arith.constant 9.99999974E-6 : f32
    %381 = vector.broadcast %cst_129 : f32 to vector<16x1xf32>
    %382 = arith.addf %378, %381 : vector<16x1xf32>
    %383 = math.rsqrt %382 : vector<16x1xf32>
    %384 = vector.broadcast %383 : vector<16x1xf32> to vector<16x32xf32>
    %385 = arith.mulf %380, %384 : vector<16x32xf32>
    %386 = vector.shape_cast %365 : vector<32xf32> to vector<1x32xf32>
    %387 = vector.broadcast %386 : vector<1x32xf32> to vector<16x32xf32>
    %388 = arith.mulf %385, %387 : vector<16x32xf32>
    %389 = vector.shape_cast %367 : vector<32xf32> to vector<1x32xf32>
    %390 = vector.broadcast %389 : vector<1x32xf32> to vector<16x32xf32>
    %391 = arith.addf %388, %390 : vector<16x32xf32>
    %c1_130 = arith.constant 1 : index
    %c0_131 = arith.constant 0 : index
    %c0_132 = arith.constant 0 : index
    %392 = vector.load %arg10[%c1_130, %c0_131, %c0_132] : memref<2x32x128xf32, #tpu.memory_space<vmem>>, vector<1x32x128xf32>
    %393 = vector.shape_cast %392 : vector<1x32x128xf32> to vector<32x128xf32>
    %cst_133 = arith.constant dense<0.000000e+00> : vector<16x128xf32>
    %394 = tpu.matmul %391, %393, %cst_133 {dimension_numbers = #tpu.dot_dimension_numbers<[1], [0], [0], [1], [0, 0, 1, 1], [], []>} : vector<16x32xf32>, vector<32x128xf32>, vector<16x128xf32> -> vector<16x128xf32>
    %c1_134 = arith.constant 1 : index
    %c0_135 = arith.constant 0 : index
    %395 = vector.load %arg11[%c1_134, %c0_135] : memref<2x128xf32, #tpu.memory_space<vmem>>, vector<1x128xf32>
    %396 = vector.shape_cast %395 : vector<1x128xf32> to vector<128xf32>
    %397 = vector.shape_cast %396 : vector<128xf32> to vector<1x128xf32>
    %398 = vector.broadcast %397 : vector<1x128xf32> to vector<16x128xf32>
    %399 = arith.addf %394, %398 : vector<16x128xf32>
    %cst_136 = arith.constant 1.702000e+00 : f32
    %400 = vector.broadcast %cst_136 : f32 to vector<16x128xf32>
    %401 = arith.mulf %400, %399 : vector<16x128xf32>
    %402 = arith.negf %401 : vector<16x128xf32>
    %403 = math.exp %402 : vector<16x128xf32>
    %cst_137 = arith.constant 1.000000e+00 : f32
    %404 = vector.broadcast %cst_137 : f32 to vector<16x128xf32>
    %405 = arith.addf %404, %403 : vector<16x128xf32>
    %406 = arith.divf %404, %405 : vector<16x128xf32>
    %407 = arith.mulf %399, %406 : vector<16x128xf32>
    %c1_138 = arith.constant 1 : index
    %c0_139 = arith.constant 0 : index
    %c0_140 = arith.constant 0 : index
    %408 = vector.load %arg12[%c1_138, %c0_139, %c0_140] : memref<2x128x32xf32, #tpu.memory_space<vmem>>, vector<1x128x32xf32>
    %409 = vector.shape_cast %408 : vector<1x128x32xf32> to vector<128x32xf32>
    %cst_141 = arith.constant dense<0.000000e+00> : vector<16x32xf32>
    %410 = tpu.matmul %407, %409, %cst_141 {dimension_numbers = #tpu.dot_dimension_numbers<[1], [0], [0], [1], [0, 0, 1, 1], [], []>} : vector<16x128xf32>, vector<128x32xf32>, vector<16x32xf32> -> vector<16x32xf32>
    %c1_142 = arith.constant 1 : index
    %c0_143 = arith.constant 0 : index
    %411 = vector.load %arg13[%c1_142, %c0_143] : memref<2x32xf32, #tpu.memory_space<vmem>>, vector<1x32xf32>
    %412 = vector.shape_cast %411 : vector<1x32xf32> to vector<32xf32>
    %413 = vector.shape_cast %412 : vector<32xf32> to vector<1x32xf32>
    %414 = vector.broadcast %413 : vector<1x32xf32> to vector<16x32xf32>
    %415 = arith.addf %410, %414 : vector<16x32xf32>
    %416 = arith.addf %363, %415 : vector<16x32xf32>
    %417 = tpu.iota {dimensions = array<i32: 0>} : vector<16x1xi32>
    %c0_144 = arith.constant 0 : index
    %418 = memref.load %arg0[%c0_144] : memref<2xi32, #tpu.memory_space<smem>>
    %c0_i32 = arith.constant 0 : i32
    %419 = arith.addi %c0_i32, %418 : i32
    %420 = vector.broadcast %419 : i32 to vector<16x1xi32>
    %421 = arith.cmpi eq, %417, %420 : vector<16x1xi32>
    %422 = arith.extui %421 : vector<16x1xi1> to vector<16x1xi32>
    %423 = arith.sitofp %422 : vector<16x1xi32> to vector<16x1xf32>
    %424 = vector.broadcast %423 : vector<16x1xf32> to vector<16x32xf32>
    %425 = arith.mulf %416, %424 : vector<16x32xf32>
    %cst_145 = arith.constant dense<0.000000e+00> : vector<32xf32>
    %426 = vector.multi_reduction <add>, %425, %cst_145 [0] : vector<16x32xf32> to vector<32xf32>
    %427 = vector.shape_cast %426 : vector<32xf32> to vector<1x32xf32>
    %c1_146 = arith.constant 1 : index
    %428 = memref.load %arg0[%c1_146] : memref<2xi32, #tpu.memory_space<smem>>
    %c8_i32_147 = arith.constant 8 : i32
    %429 = arith.addi %c8_i32_147, %428 : i32
    %430 = vector.broadcast %429 : i32 to vector<16x1xi32>
    %431 = arith.cmpi eq, %417, %430 : vector<16x1xi32>
    %432 = arith.extui %431 : vector<16x1xi1> to vector<16x1xi32>
    %433 = arith.sitofp %432 : vector<16x1xi32> to vector<16x1xf32>
    %434 = vector.broadcast %433 : vector<16x1xf32> to vector<16x32xf32>
    %435 = arith.mulf %416, %434 : vector<16x32xf32>
    %cst_148 = arith.constant dense<0.000000e+00> : vector<32xf32>
    %436 = vector.multi_reduction <add>, %435, %cst_148 [0] : vector<16x32xf32> to vector<32xf32>
    %437 = vector.shape_cast %436 : vector<32xf32> to vector<1x32xf32>
    %438 = tpu.concatenate %427, %437 in 0 : vector<1x32xf32>, vector<1x32xf32> -> vector<2x32xf32>
    %c0_149 = arith.constant 0 : index
    %c0_150 = arith.constant 0 : index
    %439 = vector.load %arg14[%c0_149, %c0_150] : memref<1x32xf32, #tpu.memory_space<vmem>>, vector<1x32xf32>
    %c0_151 = arith.constant 0 : index
    %c0_152 = arith.constant 0 : index
    %440 = vector.load %arg15[%c0_151, %c0_152] : memref<1x32xf32, #tpu.memory_space<vmem>>, vector<1x32xf32>
    %cst_153 = arith.constant dense<0.000000e+00> : vector<2xf32>
    %441 = vector.multi_reduction <add>, %438, %cst_153 [1] : vector<2x32xf32> to vector<2xf32>
    %442 = vector.shape_cast %441 : vector<2xf32> to vector<2x1xf32>
    %cst_154 = arith.constant 3.200000e+01 : f32
    %443 = vector.broadcast %cst_154 : f32 to vector<2x1xf32>
    %444 = arith.divf %442, %443 : vector<2x1xf32>
    %445 = vector.broadcast %444 : vector<2x1xf32> to vector<2x32xf32>
    %446 = arith.subf %438, %445 : vector<2x32xf32>
    %447 = arith.mulf %446, %446 : vector<2x32xf32>
    %cst_155 = arith.constant dense<0.000000e+00> : vector<2xf32>
    %448 = vector.multi_reduction <add>, %447, %cst_155 [1] : vector<2x32xf32> to vector<2xf32>
    %449 = vector.shape_cast %448 : vector<2xf32> to vector<2x1xf32>
    %cst_156 = arith.constant 3.200000e+01 : f32
    %450 = vector.broadcast %cst_156 : f32 to vector<2x1xf32>
    %451 = arith.divf %449, %450 : vector<2x1xf32>
    %452 = vector.broadcast %444 : vector<2x1xf32> to vector<2x32xf32>
    %453 = arith.subf %438, %452 : vector<2x32xf32>
    %cst_157 = arith.constant 9.99999974E-6 : f32
    %454 = vector.broadcast %cst_157 : f32 to vector<2x1xf32>
    %455 = arith.addf %451, %454 : vector<2x1xf32>
    %456 = math.rsqrt %455 : vector<2x1xf32>
    %457 = vector.broadcast %456 : vector<2x1xf32> to vector<2x32xf32>
    %458 = arith.mulf %453, %457 : vector<2x32xf32>
    %459 = vector.broadcast %439 : vector<1x32xf32> to vector<2x32xf32>
    %460 = arith.mulf %458, %459 : vector<2x32xf32>
    %461 = vector.broadcast %440 : vector<1x32xf32> to vector<2x32xf32>
    %462 = arith.addf %460, %461 : vector<2x32xf32>
    %c0_158 = arith.constant 0 : index
    %c0_159 = arith.constant 0 : index
    %463 = vector.load %arg16[%c0_158, %c0_159] : memref<32x128xf32, #tpu.memory_space<vmem>>, vector<32x128xf32>
    %cst_160 = arith.constant dense<0.000000e+00> : vector<2x128xf32>
    %464 = tpu.matmul %462, %463, %cst_160 {dimension_numbers = #tpu.dot_dimension_numbers<[1], [0], [0], [1], [0, 0, 1, 1], [], []>} : vector<2x32xf32>, vector<32x128xf32>, vector<2x128xf32> -> vector<2x128xf32>
    %c0_161 = arith.constant 0 : index
    %c0_162 = arith.constant 0 : index
    %465 = vector.load %arg17[%c0_161, %c0_162] : memref<2x128xf32, #tpu.memory_space<vmem>>, vector<2x128xf32>
    tpu.vector_store %arg17[%c0_161, %c0_162], %464 {strides = array<i32>} : memref<2x128xf32, #tpu.memory_space<vmem>>, vector<2x128xf32>,
    return
  }
}

</mosaic_0001>

<bundles_post_ra>
// kernel: tpu_custom_call.1
= control target key start
LH: loop header
LB: loop body
LE: loop exit
PB: predicated region body
PF: predicated region fallthrough
CT: control target
= control target key end

     0   :  { %s5894_s0 = inlined_call_operand.vmem [shape: s32[2], index: 0, kind: input, shape index: {}]   ;;  %s5895_s1 = inlined_call_operand.vmem [shape: f32[2,8,32], index: 1, kind: input, shape index: {}]   ;;  %s5896_s2 = inlined_call_operand.vmem [shape: f32[2,32], index: 2, kind: input, shape index: {}]   ;;  %s5897_s3 = inlined_call_operand.vmem [shape: f32[2,32], index: 3, kind: input, shape index: {}]   ;;  %s5898_s4 = inlined_call_operand.vmem [shape: f32[2,32,96], index: 4, kind: input, shape index: {}]   ;;  %s5899_s5 = inlined_call_operand.vmem [shape: f32[2,96], index: 5, kind: input, shape index: {}]   ;;  %s5900_s6 = inlined_call_operand.vmem [shape: f32[2,32,32], index: 6, kind: input, shape index: {}]   ;;  %s5901_s7 = inlined_call_operand.vmem [shape: f32[2,32], index: 7, kind: input, shape index: {}]   ;;  %s5902_s8 = inlined_call_operand.vmem [shape: f32[2,32], index: 8, kind: input, shape index: {}]   ;;  %s5903_s9 = inlined_call_operand.vmem [shape: f32[2,32], index: 9, kind: input, shape index: {}]   ;;  %s5904_s10 = inlined_call_operand.vmem [shape: f32[2,32,128], index: 10, kind: input, shape index: {}]   ;;  %s5905_s11 = inlined_call_operand.vmem [shape: f32[2,128], index: 11, kind: input, shape index: {}]   ;;  %s5906_s12 = inlined_call_operand.vmem [shape: f32[2,128,32], index: 12, kind: input, shape index: {}]   ;;  %s5907_s13 = inlined_call_operand.vmem [shape: f32[2,32], index: 13, kind: input, shape index: {}]   ;;  %s5908_s14 = inlined_call_operand.vmem [shape: f32[1,32], index: 14, kind: input, shape index: {}]   ;;  %s5909_s15 = inlined_call_operand.vmem [shape: f32[1,32], index: 15, kind: input, shape index: {}]   ;;  %s5910_s16 = inlined_call_operand.vmem [shape: f32[32,128], index: 16, kind: input, shape index: {}]   ;;  %s5911_s17 = inlined_call_operand.hbm [shape: f32[2,128], index: 17, kind: output, shape index: {}]  }
   0x1   :  { %5921 = sst [smem:[#allocation8_spill]] %s5894_s0 }
   0x2   :  { %5922 = sst [smem:[#allocation9_spill]] %s5895_s1 }
   0x3   :  { %22 = vsyncpa [#allocation4], 0 }
   0x4   :  { %23 = vsyncpa [#allocation3], 0  ;;  %s5923_s26 = sld [smem:[#allocation8_spill]] }
   0xa   :  { %s30_s27 = sshll.u32 %s5923_s26, 4  ;;  %s31_s27 = int_to_ptr.vmem [resolvable:$true] %s30_s27 }
   0xb   :  { %s5070_s28 = scalar_lea.vmem %s31_s27, 16  ;;  %p5075_p1 = scmp.lt.s32.totalorder %s31_s27, %s31_s27 }
   0xc   :  { %p5071_p0 = scmp.ne.s32.totalorder %s31_s27, %s5070_s28  ;;  %p5076_p2 = scmp.lt.s32.totalorder %s5070_s28, %s5070_s28 }
   0xe   :  { %p5077_p3 = por %p5076_p2, %p5075_p1 }
  0x10   :  { %p5078_p4 = pnand %p5077_p3, %p5071_p0 }
  0x12   :  { %5081 = shalt.err (!%p5078_p4)
}
  0x13   :  { %s5106_s29 = smov [#allocation2]  }
  0x14   :  { %33 = dma.vmem_to_smem %s31_s27, 16, %s5106_s29, [#allocation4]  }
  0x15   :  { %5102 = dma.done.wait [#allocation4], 16  }
  0x16   :  { %5103 = vsyncadd [#allocation4], 4294967280 }
  0x17   :  { %69 = sfence }
  0x18   :  { %s5924_s18 = sld [smem:[#allocation9_spill]]  ;;  %vm81_vm0 = vcmask 261120   ;;  %v124_v14 = vld [vmem:[%s5898_s4 + $0x18] sm:$0xff]  ;;  %v123_v15 = vld [vmem:[%s5898_s4 + $0x10] sm:$0xff]  ;;  %v122_v16 = vld [vmem:[%s5898_s4 + $0x8] sm:$0xff]  ;;  %v5107_v34 = vmov 0.0   ;;  %v72_v42 = vlaneseq }
  0x19   :  { %4632 = vmatprep.subr.mxu0 %v124_v14  ;;  %v121_v17 = vld [vmem:[%s5898_s4] sm:$0xff]  ;;  %4658 = vmatprep.subr.mxu1 %v5107_v34  ;;  %vm5108_vm1 = vmmov 0   ;;  %s5109_s1 = smov 96   ;;  %vm218_vm2 = vcmask 64512   ;;  %s5110_s20 = smov 64   ;;  %vm4226_vm10 = vcmask 1040384  }
  0x1a   :  { %4633 = vmatpush3.msra.mxu0 %v124_v14  ;;  %v4351_v25 = vld [vmem:[%s5896_s2] ss:$0 sm:$0xff]  ;;  %4660 = vmatprep.mubr.msk.f32.mxu1 %vm5108_vm1, %v5107_v34  ;;  %v73_v43 = vand.u32 127, %v72_v42  ;;  %v5281_v44 = vshrl.u32 %v72_v42, 7  ;;  %s5111_s21 = smov 88   ;;  %s5112_s22 = smov 120  }
  0x1b   :  { %4634 = vmatprep.subr.mxu0 %v123_v15  ;;  %v4352_v27 = vld [vmem:[%s5897_s3] ss:$0 sm:$0xff]  ;;  %s5113_s23 = smov 56   ;;  %s5114_s24 = smov 80   ;;  %vm4230_vm11 = vcmask 254976  }
  0x1c   :  { %4635 = vmatpush3.msra.mxu0 %v123_v15  ;;  %v4353_v35 = vld [vmem:[%s5899_s5] ss:$0 sm:$0xff]  ;;  %vm74_vm3 = vcmp.lt.s32.totalorder %v73_v43, 8  ;;  %vm77_vm4 = vcmp.ge.s32.totalorder %v5281_v44, %v73_v43  ;;  %s5115_s25 = smov 112   ;;  %s5919_s0 = smov 48  }
  0x1d   :  { %4636 = vmatprep.subr.mxu0 %v122_v16  ;;  %vm5284_vm5 = vmand %vm74_vm3, %vm77_vm4  ;;  %s5917_s30 = smov 72   ;;  %s5913_s27 = smov 40  }
  0x1e   :  { %v5217_v0 = vld [vmem:[%s5924_s18] sm:$0xff]  ;;  %v5222_v1 = vld [vmem:[%s5924_s18 + $0x8] sm:$0xff]  ;;  %4637 = vmatpush3.msra.mxu0 %v122_v16  ;;  %s5915_s18 = smov 104   ;;  %s5930_s28 = smov 40  }
  0x1f   :  { %v82_v2 = vsel %vm81_vm0, %v5217_v0, 0.0  ;;  %v85_v3 = vsel %vm81_vm0, %v5222_v1, 0.0  ;;  %4638 = vmatprep.subr.mxu0 %v121_v17 }
  0x20   :  { %83 = vadd.xlane.f32.xlu0 %v82_v2  ;;  %4639 = vmatpush3.msra.mxu0 %v121_v17 }
  0x21   :  { %4643 = vmatprep.subr.mxu0 %v5107_v34 }
  0x24   :  { %86 = vadd.xlane.f32.xlu0 %v85_v3 }
  0xa9   :  { %v84_v4 = vpop.xlane.xlu0 %83 }
  0xaa   :  { %v89_v5 = vmul.f32 0.03125, %v84_v4 }
  0xac   :  { %v91_v6 = vsub.f32 %v5217_v0, %v89_v5 }
  0xad   :  { %v87_v7 = vpop.xlane.xlu0 %86 }
  0xae   :  { %v90_v8 = vmul.f32 0.03125, %v87_v7  ;;  %v93_v9 = vmul.f32 %v91_v6, %v91_v6 }
  0xb0   :  { %v92_v10 = vsub.f32 %v5222_v1, %v90_v8  ;;  %v95_v11 = vsel %vm81_vm0, %v93_v9, 0.0 }
  0xb1   :  { %96 = vadd.xlane.f32.xlu1 %v95_v11 }
  0xb2   :  { %v94_v12 = vmul.f32 %v92_v10, %v92_v10 }
  0xb4   :  { %v98_v13 = vsel %vm81_vm0, %v94_v12, 0.0 }
  0xb5   :  { %99 = vadd.xlane.f32.xlu1 %v98_v13 }
 0x13a   :  { %v97_v18 = vpop.xlane.xlu1 %96 }
 0x13b   :  { %v101_v19 = vmul.f32 0.03125, %v97_v18 }
 0x13d   :  { %v103_v20 = vadd.f32 1e-05, %v101_v19 }
 0x13e   :  { %v100_v21 = vpop.xlane.xlu1 %99 }
 0x13f   :  { %4972 = vrsqrt.f32 %v103_v20  ;;  %v102_v22 = vmul.f32 0.03125, %v100_v21 }
 0x141   :  { %v104_v23 = vadd.f32 1e-05, %v102_v22 }
 0x143   :  { %4974 = vrsqrt.f32 %v104_v23 }
 0x14c   :  { %v4973_v24 = vpop.eup %4972 }
 0x14d   :  { %v107_v26 = vmul.f32 %v4973_v24, %v91_v6 }
 0x14f   :  { %v113_v28 = vmul.f32 %v4351_v25, %v107_v26 }
 0x150   :  { %v4975_v29 = vpop.eup %4974 }
 0x151   :  { %v108_v30 = vmul.f32 %v4975_v29, %v92_v10  ;;  %v119_v31 = vadd.f32 %v4352_v27, %v113_v28 }
 0x153   :  { %v114_v32 = vmul.f32 %v4351_v25, %v108_v30  ;;  %4640 = vmatprep.mubr.msk.f32.mxu0 %vm81_vm0, %v119_v31 }
 0x155   :  { %v120_v33 = vadd.f32 %v4352_v27, %v114_v32 }
 0x157   :  { %4641 = vmatmul.mubr.msk.f32.vlgmr.msra.gmra.mxu0 %vm81_vm0, %v120_v33 }
 0x158   :  { %4645 = vmatprep.mubr.msk.f32.mxu0 %vm5108_vm1, %v5107_v34 }
 0x217   :  { %v4642_v36 = vpop.f32.mrf.mxu0 }
 0x218   :  { %v5261_v37 = vadd.f32 %v4642_v36, %v4353_v35 }
 0x219   :  { %v202_v38 = vpop.f32.mrf.mxu0 }
 0x21a   :  { %v5263_v39 = vadd.f32 %v4353_v35, %v202_v38  ;;  %294 = vrot.lane.b32.xlu1 %v5261_v37, %s5109_s1 }
 0x21c   :  { %216 = vrot.lane.b32.xlu0 %v5263_v39, %s5109_s1 }
 0x28c   :  { %v295_v41 = vpop.permute.xlu1 %294 }
 0x28e   :  { %v217_v40 = vpop.permute.xlu0 %216 }
 0x28f   :  { %4644 = vmatpush3.xpose.msk.msra.mxu0 %vm218_vm2, %v217_v40 }
 0x290   :  { %4648 = vmatprep.subr.mxu0 %v5107_v34 }
 0x292   :  { %4646 = vmatmul.mubr.msk.f32.vlgmr.msra.gmra.mxu0 %vm218_vm2, %v5263_v39 }
 0x293   :  { %4649 = vmatpush3.xpose.msk.msra.mxu0 %vm218_vm2, %v295_v41  ;;  %4650 = vmatprep.mubr.msk.f32.mxu0 %vm5108_vm1, %v5107_v34 }
 0x294   :  { %4653 = vmatprep.subr.mxu0 %v5107_v34 }
 0x296   :  { %4651 = vmatmul.mubr.msk.f32.vlgmr.msra.gmra.mxu0 %vm218_vm2, %v5261_v37 }
 0x297   :  { %4655 = vmatprep.mubr.msk.f32.mxu0 %vm5108_vm1, %v5107_v34 }
 0x352   :  { %v289_v45 = vpop.f32.mrf.mxu0 }
 0x353   :  { %v370_v47 = vmul.f32 0.35355338, %v289_v45  ;;  %v211_v45 = vld [vmem:[%s5900_s6] sm:$0xff] }
 0x354   :  { %v4647_v48 = vpop.f32.mrf.mxu0 }
 0x355   :  { %v374_v49 = vsel %vm5284_vm5, %v370_v47, -1e+30 }
 0x356   :  { %v366_v50 = vpop.f32.mrf.mxu0  ;;  %v376_v51 = vsel %vm218_vm2, %v374_v49, -inf }
 0x357   :  { %v371_v52 = vmul.f32 0.35355338, %v366_v50  ;;  %377 = vmax.xlane.f32.xlu1 %v376_v51 }
 0x358   :  { %v4652_v53 = vpop.f32.mrf.mxu0 }
 0x359   :  { %v375_v54 = vsel %vm5284_vm5, %v371_v52, -1e+30 }
 0x35a   :  { %v379_v55 = vsel %vm218_vm2, %v375_v54, -inf }
 0x35b   :  { %380 = vmax.xlane.f32.xlu0 %v379_v55 }
 0x368   :  { %474 = vrot.lane.b32.xlu1 %v5261_v37, %s5110_s20 }
 0x36c   :  { %552 = vrot.lane.b32.xlu1 %v5263_v39, %s5111_s21 }
 0x370   :  { %630 = vrot.lane.b32.xlu1 %v5261_v37, %s5111_s21 }
 0x3e0   :  { %v378_v56 = vpop.xlane.xlu1 %377 }
 0x3e1   :  { %v382_v57 = vsub.f32 %v374_v49, %v378_v56 }
 0x3e3   :  { %v384_v58 = vmul.f32 1.442695, %v382_v57  ;;  %v212_v57 = vld [vmem:[%s5900_s6 + $0x8] sm:$0xff] }
 0x3e4   :  { %v475_v59 = vpop.permute.xlu1 %474  ;;  %v381_v60 = vpop.xlane.xlu0 %380 }
 0x3e5   :  { %4976 = vpow2.f32 %v384_v58  ;;  %v383_v61 = vsub.f32 %v375_v54, %v381_v60  ;;  %4659 = vmatpush3.msra.mxu1 %v475_v59 }
 0x3e6   :  { %4668 = vmatprep.subr.mxu1 %v5107_v34 }
 0x3e7   :  { %v386_v62 = vmul.f32 1.442695, %v383_v61 }
 0x3e8   :  { %v553_v5 = vpop.permute.xlu1 %552 }
 0x3e9   :  { %4978 = vpow2.f32 %v386_v62 }
 0x3ec   :  { %v631_v6 = vpop.permute.xlu1 %630 }
 0x3f2   :  { %v4977_v63 = vpop.eup %4976 }
 0x3f3   :  { %v388_v2 = vsel %vm218_vm2, %v4977_v63, 0.0 }
 0x3f4   :  { %389 = vadd.xlane.f32.xlu0 %v388_v2 }
 0x3f6   :  { %v4979_v3 = vpop.eup %4978 }
 0x3f7   :  { %v391_v4 = vsel %vm218_vm2, %v4979_v3, 0.0 }
 0x3f8   :  { %392 = vadd.xlane.f32.xlu1 %v391_v4 }
 0x409   :  { %628 = vrot.lane.b32.xlu1 %v5261_v37, %s5112_s22 }
 0x40a   :  { %398 = vrot.lane.b32.xlu0 %v5263_v39, %s5110_s20 }
 0x40e   :  { %550 = vrot.lane.b32.xlu0 %v5263_v39, %s5112_s22 }
 0x47d   :  { %v390_v7 = vpop.xlane.xlu0 %389 }
 0x47e   :  { %4980 = vrcp.f32 %v390_v7 }
 0x481   :  { %v393_v8 = vpop.xlane.xlu1 %392  ;;  %v399_v9 = vpop.permute.xlu0 %398 }
 0x482   :  { %4982 = vrcp.f32 %v393_v8  ;;  %4654 = vmatpush3.msra.mxu0 %v399_v9 }
 0x483   :  { %4663 = vmatprep.subr.mxu0 %v5107_v34 }
 0x485   :  { %v551_v14 = vpop.permute.xlu0 %550  ;;  %v629_v15 = vpop.permute.xlu1 %628 }
 0x48b   :  { %v4981_v10 = vpop.eup %4980 }
 0x48c   :  { %v396_v11 = vmul.f32 %v4981_v10, %v4977_v63 }
 0x48e   :  { %4656 = vmatmul.mubr.msk.f32.vlgmr.msra.gmra.mxu0 %vm218_vm2, %v396_v11 }
 0x48f   :  { %v4983_v12 = vpop.eup %4982  ;;  %4664 = vmatpush3.xpose.msk.msra.mxu0 %vm218_vm2, %v553_v5  ;;  %4665 = vmatprep.mubr.msk.f32.mxu0 %vm5108_vm1, %v5107_v34 }
 0x490   :  { %v397_v13 = vmul.f32 %v4983_v12, %v4979_v3  ;;  %4673 = vmatprep.subr.mxu0 %v5107_v34 }
 0x492   :  { %4661 = vmatmul.mubr.msk.f32.vlgmr.msra.gmra.mxu1 %vm218_vm2, %v397_v13  ;;  %4666 = vmatmul.mubr.msk.f32.vlgmr.msra.gmra.mxu0 %vm218_vm2, %v551_v14 }
 0x493   :  { %4669 = vmatpush3.xpose.msk.msra.mxu1 %vm218_vm2, %v631_v6  ;;  %4670 = vmatprep.mubr.msk.f32.mxu1 %vm5108_vm1, %v5107_v34 }
 0x494   :  { %4678 = vmatprep.subr.mxu1 %v5107_v34  ;;  %4675 = vmatprep.mubr.msk.f32.mxu0 %vm5108_vm1, %v5107_v34 }
 0x496   :  { %4671 = vmatmul.mubr.msk.f32.vlgmr.msra.gmra.mxu1 %vm218_vm2, %v629_v15 }
 0x497   :  { %4680 = vmatprep.mubr.msk.f32.mxu1 %vm5108_vm1, %v5107_v34 }
 0x54e   :  { %v470_v16 = vpop.f32.mrf.mxu0 }
 0x550   :  { %v4657_v17 = vpop.f32.mrf.mxu0 }
 0x552   :  { %v546_v18 = vpop.f32.mrf.mxu1  ;;  %v624_v19 = vpop.f32.mrf.mxu0 }
 0x553   :  { %v706_v20 = vmul.f32 0.35355338, %v624_v19 }
 0x554   :  { %v4662_v21 = vpop.f32.mrf.mxu1  ;;  %v4667_v22 = vpop.f32.mrf.mxu0 }
 0x555   :  { %v708_v23 = vsel %vm5284_vm5, %v706_v20, -1e+30 }
 0x556   :  { %v702_v24 = vpop.f32.mrf.mxu1  ;;  %v710_v25 = vsel %vm218_vm2, %v708_v23, -inf }
 0x557   :  { %v707_v26 = vmul.f32 0.35355338, %v702_v24  ;;  %711 = vmax.xlane.f32.xlu0 %v710_v25 }
 0x558   :  { %v4672_v27 = vpop.f32.mrf.mxu1 }
 0x559   :  { %v709_v28 = vsel %vm5284_vm5, %v707_v26, -1e+30 }
 0x55a   :  { %v713_v29 = vsel %vm218_vm2, %v709_v28, -inf }
 0x55b   :  { %714 = vmax.xlane.f32.xlu1 %v713_v29 }
 0x56c   :  { %808 = vrot.lane.b32.xlu1 %v5261_v37, %s5113_s23 }
 0x570   :  { %1048 = vrot.lane.b32.xlu1 %v5263_v39, %s5114_s24 }
 0x574   :  { %1126 = vrot.lane.b32.xlu1 %v5261_v37, %s5114_s24 }
 0x578   :  { %1124 = vrot.lane.b32.xlu1 %v5261_v37, %s5115_s25 }
 0x5e0   :  { %v712_v30 = vpop.xlane.xlu0 %711 }
 0x5e1   :  { %v716_v31 = vsub.f32 %v708_v23, %v712_v30 }
 0x5e3   :  { %v718_v32 = vmul.f32 1.442695, %v716_v31 }
 0x5e4   :  { %v715_v33 = vpop.xlane.xlu1 %714 }
 0x5e5   :  { %4984 = vpow2.f32 %v718_v32  ;;  %v717_v35 = vsub.f32 %v709_v28, %v715_v33 }
 0x5e7   :  { %v720_v36 = vmul.f32 1.442695, %v717_v35 }
 0x5e8   :  { %v809_v38 = vpop.permute.xlu1 %808 }
 0x5e9   :  { %4986 = vpow2.f32 %v720_v36  ;;  %4679 = vmatpush3.msra.mxu1 %v809_v38 }
 0x5ea   :  { %4688 = vmatprep.subr.mxu1 %v211_v45 }
 0x5ec   :  { %v1049_v52 = vpop.permute.xlu1 %1048 }
 0x5f0   :  { %v1127_v55 = vpop.permute.xlu1 %1126 }
 0x5f2   :  { %v4985_v40 = vpop.eup %4984 }
 0x5f3   :  { %v722_v41 = vsel %vm218_vm2, %v4985_v40, 0.0 }
 0x5f4   :  { %723 = vadd.xlane.f32.xlu0 %v722_v41  ;;  %v1125_v56 = vpop.permute.xlu1 %1124 }
 0x5f6   :  { %v4987_v42 = vpop.eup %4986 }
 0x5f7   :  { %v725_v43 = vsel %vm218_vm2, %v4987_v42, 0.0 }
 0x5f8   :  { %726 = vadd.xlane.f32.xlu0 %v725_v43 }
 0x60e   :  { %732 = vrot.lane.b32.xlu0 %v5263_v39, %s5113_s23 }
 0x612   :  { %1046 = vrot.lane.b32.xlu0 %v5263_v39, %s5115_s25 }
 0x67d   :  { %v724_v47 = vpop.xlane.xlu0 %723 }
 0x67e   :  { %4988 = vrcp.f32 %v724_v47 }
 0x681   :  { %v727_v48 = vpop.xlane.xlu0 %726 }
 0x682   :  { %4990 = vrcp.f32 %v727_v48 }
 0x685   :  { %v733_v49 = vpop.permute.xlu0 %732 }
 0x686   :  { %4674 = vmatpush3.msra.mxu0 %v733_v49 }
 0x687   :  { %4683 = vmatprep.subr.mxu0 %v212_v57 }
 0x689   :  { %v1047_v62 = vpop.permute.xlu0 %1046 }
 0x68b   :  { %v4989_v50 = vpop.eup %4988 }
 0x68c   :  { %v730_v51 = vmul.f32 %v4989_v50, %v4985_v40  ;;  %v213_v40 = vld [vmem:[%s5900_s6 + $0x10] sm:$0xff] }
 0x68e   :  { %4676 = vmatmul.mubr.msk.f32.vlgmr.msra.gmra.mxu0 %vm218_vm2, %v730_v51 }
 0x68f   :  { %v4991_v53 = vpop.eup %4990  ;;  %4684 = vmatpush3.msra.mxu0 %v212_v57 }
 0x690   :  { %v731_v54 = vmul.f32 %v4991_v53, %v4987_v42  ;;  %4693 = vmatprep.subr.mxu0 %v5107_v34 }
 0x692   :  { %4681 = vmatmul.mubr.msk.f32.vlgmr.msra.gmra.mxu1 %vm218_vm2, %v731_v54 }
 0x693   :  { %4690 = vmatprep.mubr.msk.f32.mxu1 %vm218_vm2, %v470_v16  ;;  %4689 = vmatpush3.msra.mxu1 %v211_v45 }
 0x694   :  { %4698 = vmatprep.subr.mxu1 %v5107_v34 }
 0x696   :  { %4691 = vmatmul.mubr.msk.f32.vlgmr.msra.gmra.mxu1 %vm218_vm2, %v546_v18 }
 0x697   :  { %4699 = vmatpush3.xpose.msk.msra.mxu1 %vm218_vm2, %v1127_v55  ;;  %4700 = vmatprep.mubr.msk.f32.mxu1 %vm5108_vm1, %v5107_v34 }
 0x698   :  { %4708 = vmatprep.subr.mxu1 %v5107_v34 }
 0x69a   :  { %4701 = vmatmul.mubr.msk.f32.vlgmr.msra.gmra.mxu1 %vm218_vm2, %v1125_v56 }
 0x69b   :  { %4710 = vmatprep.mubr.msk.f32.mxu1 %vm5108_vm1, %v5107_v34 }
 0x74e   :  { %v804_v58 = vpop.f32.mrf.mxu0 }
 0x74f   :  { %4685 = vmatprep.mubr.msk.f32.mxu0 %vm218_vm2, %v804_v58 }
 0x750   :  { %v4677_v59 = vpop.f32.mrf.mxu0 }
 0x752   :  { %v880_v60 = vpop.f32.mrf.mxu1 }
 0x753   :  { %4686 = vmatmul.mubr.msk.f32.vlgmr.msra.gmra.mxu0 %vm218_vm2, %v880_v60 }
 0x754   :  { %4694 = vmatpush3.xpose.msk.msra.mxu0 %vm218_vm2, %v1049_v52  ;;  %v4682_v61 = vpop.f32.mrf.mxu1  ;;  %4695 = vmatprep.mubr.msk.f32.mxu0 %vm5108_vm1, %v5107_v34 }
 0x755   :  { %4703 = vmatprep.subr.mxu0 %v5107_v34 }
 0x756   :  { %v5371_v63 = vpop.f32.mrf.mxu1 }
 0x757   :  { %4696 = vmatmul.mubr.msk.f32.vlgmr.msra.gmra.mxu0 %vm218_vm2, %v1047_v62 }
 0x758   :  { %v5374_v2 = vpop.f32.mrf.mxu1  ;;  %4705 = vmatprep.mubr.msk.f32.mxu0 %vm5108_vm1, %v5107_v34 }
 0x75a   :  { %v1198_v3 = vpop.f32.mrf.mxu1 }
 0x75b   :  { %v1203_v4 = vmul.f32 0.35355338, %v1198_v3 }
 0x75c   :  { %v4702_v5 = vpop.f32.mrf.mxu1 }
 0x75d   :  { %v1205_v6 = vsel %vm5284_vm5, %v1203_v4, -1e+30 }
 0x75e   :  { %v1209_v7 = vsel %vm218_vm2, %v1205_v6, -inf }
 0x75f   :  { %1210 = vmax.xlane.f32.xlu1 %v1209_v7 }
 0x770   :  { %1304 = vrot.lane.b32.xlu1 %v5261_v37, %s5919_s0 }
 0x774   :  { %1465 = vrot.lane.b32.xlu1 %v5263_v39, %s5917_s30 }
 0x778   :  { %1543 = vrot.lane.b32.xlu1 %v5261_v37, %s5917_s30 }
 0x77c   :  { %1541 = vrot.lane.b32.xlu1 %v5261_v37, %s5915_s18 }
 0x7e8   :  { %v1211_v8 = vpop.xlane.xlu1 %1210 }
 0x7e9   :  { %v1213_v10 = vsub.f32 %v1205_v6, %v1211_v8 }
 0x7eb   :  { %v1216_v11 = vmul.f32 1.442695, %v1213_v10 }
 0x7ec   :  { %v1305_v9 = vpop.permute.xlu1 %1304 }
 0x7ed   :  { %4709 = vmatpush3.msra.mxu1 %v1305_v9  ;;  %4992 = vpow2.f32 %v1216_v11 }
 0x7ee   :  { %4718 = vmatprep.subr.mxu1 %v5107_v34 }
 0x7f0   :  { %v1466_v29 = vpop.permute.xlu1 %1465 }
 0x7f4   :  { %v1544_v48 = vpop.permute.xlu1 %1543 }
 0x7f8   :  { %v1542_v51 = vpop.permute.xlu1 %1541 }
 0x7fa   :  { %v4993_v19 = vpop.eup %4992 }
 0x7fb   :  { %v1221_v20 = vsel %vm218_vm2, %v4993_v19, 0.0 }
 0x813   :  { %v5390_v12 = vpop.f32.mrf.mxu0 }
 0x814   :  { %v1043_v57 = vadd.f32 %v5371_v63, %v5390_v12 }
 0x815   :  { %v5392_v13 = vpop.f32.mrf.mxu0 }
 0x816   :  { %v1038_v59 = vadd.f32 %v5374_v2, %v5392_v13 }
 0x817   :  { %v1120_v14 = vpop.f32.mrf.mxu0 }
 0x818   :  { %v1202_v15 = vmul.f32 0.35355338, %v1120_v14 }
 0x819   :  { %v4697_v16 = vpop.f32.mrf.mxu0 }
 0x81a   :  { %v1204_v17 = vsel %vm5284_vm5, %v1202_v15, -1e+30 }
 0x81b   :  { %v1206_v18 = vsel %vm218_vm2, %v1204_v17, -inf }
 0x81c   :  { %1207 = vmax.xlane.f32.xlu0 %v1206_v18  ;;  %v214_v18 = vld [vmem:[%s5900_s6 + $0x18] sm:$0xff] }
 0x820   :  { %1222 = vadd.xlane.f32.xlu0 %v1221_v20 }
 0x8a5   :  { %v1208_v21 = vpop.xlane.xlu0 %1207 }
 0x8a6   :  { %v1212_v22 = vsub.f32 %v1204_v17, %v1208_v21 }
 0x8a8   :  { %v1214_v23 = vmul.f32 1.442695, %v1212_v22 }
 0x8a9   :  { %v1223_v24 = vpop.xlane.xlu0 %1222 }
 0x8aa   :  { %4994 = vpow2.f32 %v1214_v23 }
 0x8ab   :  { %4996 = vrcp.f32 %v1223_v24  ;;  %v4388_v24 = vld [vmem:[%s5901_s7] ss:$0 sm:$0xff] }
 0x8b7   :  { %v4995_v25 = vpop.eup %4994 }
 0x8b8   :  { %v4997_v26 = vpop.eup %4996  ;;  %v1218_v27 = vsel %vm218_vm2, %v4995_v25, 0.0 }
 0x8b9   :  { %1219 = vadd.xlane.f32.xlu0 %v1218_v27  ;;  %v1227_v28 = vmul.f32 %v4997_v26, %v4993_v19 }
 0x8bb   :  { %4711 = vmatmul.mubr.msk.f32.vlgmr.msra.gmra.mxu1 %vm218_vm2, %v1227_v28 }
 0x8bc   :  { %4719 = vmatpush3.xpose.msk.msra.mxu1 %vm218_vm2, %v1466_v29  ;;  %4720 = vmatprep.mubr.msk.f32.mxu1 %vm5108_vm1, %v5107_v34 }
 0x8bd   :  { %4728 = vmatprep.subr.mxu1 %v5107_v34 }
 0x8cf   :  { %1228 = vrot.lane.b32.xlu0 %v5263_v39, %s5919_s0 }
 0x8d3   :  { %1463 = vrot.lane.b32.xlu0 %v5263_v39, %s5915_s18 }
 0x942   :  { %v1220_v30 = vpop.xlane.xlu0 %1219 }
 0x943   :  { %4998 = vrcp.f32 %v1220_v30 }
 0x946   :  { %v1229_v31 = vpop.permute.xlu0 %1228 }
 0x947   :  { %4704 = vmatpush3.msra.mxu0 %v1229_v31 }
 0x948   :  { %4713 = vmatprep.subr.mxu0 %v213_v40 }
 0x94a   :  { %v1464_v32 = vpop.permute.xlu0 %1463 }
 0x94b   :  { %4721 = vmatmul.mubr.msk.f32.vlgmr.msra.gmra.mxu1 %vm218_vm2, %v1464_v32 }
 0x94c   :  { %4730 = vmatprep.mubr.msk.f32.mxu1 %vm5108_vm1, %v5107_v34 }
 0x950   :  { %v4999_v33 = vpop.eup %4998 }
 0x951   :  { %v1226_v35 = vmul.f32 %v4999_v33, %v4995_v25 }
 0x953   :  { %4706 = vmatmul.mubr.msk.f32.vlgmr.msra.gmra.mxu0 %vm218_vm2, %v1226_v35 }
 0x954   :  { %4714 = vmatpush3.msra.mxu0 %v213_v40 }
 0x955   :  { %4723 = vmatprep.subr.mxu0 %v5107_v34 }
 0x97b   :  { %v1376_v36 = vpop.f32.mrf.mxu1 }
 0x97d   :  { %v4712_v38 = vpop.f32.mrf.mxu1 }
 0xa0b   :  { %v1537_v41 = vpop.f32.mrf.mxu1 }
 0xa0c   :  { %v1619_v42 = vmul.f32 0.35355338, %v1537_v41 }
 0xa0d   :  { %v4722_v43 = vpop.f32.mrf.mxu1 }
 0xa0e   :  { %v1621_v45 = vsel %vm5284_vm5, %v1619_v42, -1e+30 }
 0xa0f   :  { %v1623_v47 = vsel %vm218_vm2, %v1621_v45, -inf }
 0xa10   :  { %1624 = vmax.xlane.f32.xlu0 %v1623_v47  ;;  %v1931_v47 = vld [vmem:[%s5904_s10 + $0x10] sm:$0xff] }
 0xa13   :  { %v1300_v49 = vpop.f32.mrf.mxu0 }
 0xa14   :  { %4715 = vmatprep.mubr.msk.f32.mxu0 %vm218_vm2, %v1300_v49  ;;  %v1929_v49 = vld [vmem:[%s5904_s10] sm:$0xff] }
 0xa15   :  { %v4707_v50 = vpop.f32.mrf.mxu0  ;;  %4716 = vmatmul.mubr.msk.f32.vlgmr.msra.gmra.mxu0 %vm218_vm2, %v1376_v36 }
 0xa16   :  { %4724 = vmatpush3.xpose.msk.msra.mxu0 %vm218_vm2, %v1544_v48  ;;  %4725 = vmatprep.mubr.msk.f32.mxu0 %vm5108_vm1, %v5107_v34  ;;  %v1930_v48 = vld [vmem:[%s5904_s10 + $0x8] sm:$0xff] }
 0xa17   :  { %4733 = vmatprep.subr.mxu0 %v5107_v34 }
 0xa19   :  { %4726 = vmatmul.mubr.msk.f32.vlgmr.msra.gmra.mxu0 %vm218_vm2, %v1542_v51 }
 0xa1a   :  { %4735 = vmatprep.mubr.msk.f32.mxu0 %vm5108_vm1, %v5107_v34 }
 0xa99   :  { %v1625_v52 = vpop.xlane.xlu0 %1624 }
 0xa9a   :  { %v1629_v53 = vsub.f32 %v1621_v45, %v1625_v52  ;;  %v1932_v45 = vld [vmem:[%s5904_s10 + $0x18] sm:$0xff] }
 0xa9c   :  { %v1631_v54 = vmul.f32 1.442695, %v1629_v53 }
 0xa9e   :  { %5000 = vpow2.f32 %v1631_v54 }
 0xaab   :  { %v5001_v55 = vpop.eup %5000 }
 0xaac   :  { %v1635_v56 = vsel %vm218_vm2, %v5001_v55, 0.0 }
 0xaad   :  { %1636 = vadd.xlane.f32.xlu0 %v1635_v56 }
 0xad5   :  { %v4717_v58 = vpop.f32.mrf.mxu0 }
 0xad6   :  { %v1462_v60 = vadd.f32 %v4717_v58, %v1043_v57  ;;  %v4389_v57 = vld [vmem:[%s5902_s8] ss:$0 sm:$0xff] }
 0xad7   :  { %v1452_v61 = vpop.f32.mrf.mxu0 }
 0xad8   :  { %v1461_v62 = vadd.f32 %v1452_v61, %v1038_v59 }
 0xad9   :  { %v1615_v3 = vpop.f32.mrf.mxu0 }
 0xada   :  { %v1620_v4 = vmul.f32 0.35355338, %v1615_v3 }
 0xadb   :  { %v4727_v5 = vpop.f32.mrf.mxu0 }
 0xadc   :  { %v1622_v6 = vsel %vm5284_vm5, %v1620_v4, -1e+30 }
 0xadd   :  { %v1626_v7 = vsel %vm218_vm2, %v1622_v6, -inf }
 0xade   :  { %1627 = vmax.xlane.f32.xlu1 %v1626_v7  ;;  %v2049_v7 = vld [vmem:[%s5906_s12 + $0x70] sm:$0xff] }
 0xaef   :  { %1721 = vrot.lane.b32.xlu1 %v5261_v37, %s5913_s27 }
 0xb36   :  { %v1637_v12 = vpop.xlane.xlu0 %1636 }
 0xb67   :  { %v1628_v63 = vpop.xlane.xlu1 %1627 }
 0xb68   :  { %v1630_v8 = vsub.f32 %v1622_v6, %v1628_v63  ;;  %v2050_v6 = vld [vmem:[%s5906_s12 + $0x78] sm:$0xff]  ;;  %v2048_v63 = vld [vmem:[%s5906_s12 + $0x68] sm:$0xff] }
 0xb6a   :  { %v1633_v9 = vmul.f32 1.442695, %v1630_v8  ;;  %v2047_v8 = vld [vmem:[%s5906_s12 + $0x60] sm:$0xff] }
 0xb6b   :  { %v1722_v2 = vpop.permute.xlu1 %1721 }
 0xb6c   :  { %5002 = vpow2.f32 %v1633_v9  ;;  %4734 = vmatpush3.msra.mxu0 %v1722_v2  ;;  %v2046_v9 = vld [vmem:[%s5906_s12 + $0x58] sm:$0xff]  ;;  %v2045_v2 = vld [vmem:[%s5906_s12 + $0x50] sm:$0xff] }
 0xb6d   :  { %5004 = vrcp.f32 %v1637_v12  ;;  %4743 = vmatprep.subr.mxu0 %v1932_v45  ;;  %v2042_v12 = vld [vmem:[%s5906_s12 + $0x38] sm:$0xff] }
 0xb79   :  { %v5003_v10 = vpop.eup %5002 }
 0xb7a   :  { %v1638_v11 = vsel %vm218_vm2, %v5003_v10, 0.0  ;;  %v5005_v14 = vpop.eup %5004 }
 0xb7b   :  { %1639 = vadd.xlane.f32.xlu0 %v1638_v11  ;;  %v1643_v37 = vmul.f32 %v5005_v14, %v5001_v55  ;;  %v2043_v11 = vld [vmem:[%s5906_s12 + $0x40] sm:$0xff]  ;;  %v2040_v14 = vld [vmem:[%s5906_s12 + $0x28] sm:$0xff] }
 0xb91   :  { %1645 = vrot.lane.b32.xlu0 %v5263_v39, %s5913_s27 }
 0xc04   :  { %v1640_v13 = vpop.xlane.xlu0 %1639 }
 0xc05   :  { %5006 = vrcp.f32 %v1640_v13  ;;  %v2041_v13 = vld [vmem:[%s5906_s12 + $0x30] sm:$0xff] }
 0xc08   :  { %v1646_v15 = vpop.permute.xlu0 %1645 }
 0xc09   :  { %4729 = vmatpush3.msra.mxu1 %v1646_v15  ;;  %v2039_v15 = vld [vmem:[%s5906_s12 + $0x20] sm:$0xff] }
 0xc0a   :  { %4731 = vmatmul.mubr.msk.f32.vlgmr.msra.gmra.mxu1 %vm218_vm2, %v1643_v37  ;;  %4738 = vmatprep.subr.mxu1 %v214_v18  ;;  %v2038_v37 = vld [vmem:[%s5906_s12 + $0x18] sm:$0xff] }
 0xc0b   :  { %4739 = vmatpush3.msra.mxu1 %v214_v18  ;;  %v2035_v18 = vld [vmem:[%s5906_s12] sm:$0xff] }
 0xc0c   :  { %4754 = vmatprep.subr.mxu1 %v2050_v6 }
 0xc12   :  { %v5007_v16 = vpop.eup %5006 }
 0xc13   :  { %v1644_v17 = vmul.f32 %v5007_v16, %v5003_v10  ;;  %v2044_v10 = vld [vmem:[%s5906_s12 + $0x48] sm:$0xff]  ;;  %v2037_v16 = vld [vmem:[%s5906_s12 + $0x10] sm:$0xff] }
 0xc15   :  { %4736 = vmatmul.mubr.msk.f32.vlgmr.msra.gmra.mxu0 %vm218_vm2, %v1644_v17  ;;  %v2036_v17 = vld [vmem:[%s5906_s12 + $0x8] sm:$0xff] }
 0xc16   :  { %4744 = vmatpush3.msra.mxu0 %v1932_v45 }
 0xc17   :  { %4745 = vmatprep.subr.mxu0 %v1931_v47 }
 0xc18   :  { %4746 = vmatpush3.msra.mxu0 %v1931_v47 }
 0xc19   :  { %4747 = vmatprep.subr.mxu0 %v1930_v48 }
 0xc1a   :  { %4748 = vmatpush3.msra.mxu0 %v1930_v48 }
 0xc1b   :  { %4749 = vmatprep.subr.mxu0 %v1929_v49 }
 0xc1c   :  { %4750 = vmatpush3.msra.mxu0 %v1929_v49 }
 0xcca   :  { %v1717_v39 = vpop.f32.mrf.mxu1 }
 0xccb   :  { %4740 = vmatprep.mubr.msk.f32.mxu1 %vm218_vm2, %v1717_v39  ;;  %v4391_v39 = vld [vmem:[%s5905_s11] ss:$0 sm:$0xff] }
 0xccc   :  { %v4732_v19 = vpop.f32.mrf.mxu1 }
 0xcd5   :  { %v1793_v20 = vpop.f32.mrf.mxu0 }
 0xcd6   :  { %4741 = vmatmul.mubr.msk.f32.vlgmr.msra.gmra.mxu1 %vm218_vm2, %v1793_v20 }
 0xcd7   :  { %v4737_v21 = vpop.f32.mrf.mxu0  ;;  %4755 = vmatpush3.msra.mxu1 %v2050_v6 }
 0xcd8   :  { %4756 = vmatprep.subr.mxu1 %v2049_v7 }
 0xcd9   :  { %4757 = vmatpush3.msra.mxu1 %v2049_v7 }
 0xcda   :  { %4758 = vmatprep.subr.mxu1 %v2048_v63 }
 0xcdb   :  { %4759 = vmatpush3.msra.mxu1 %v2048_v63  ;;  %v4397_v63 = vld [vmem:[%s5896_s2 + $0x1] ss:$0 sm:$0xff] }
 0xcdc   :  { %4760 = vmatprep.subr.mxu1 %v2047_v8 }
 0xcdd   :  { %4761 = vmatpush3.msra.mxu1 %v2047_v8 }
 0xcde   :  { %4762 = vmatprep.subr.mxu1 %v2046_v9 }
 0xcdf   :  { %4763 = vmatpush3.msra.mxu1 %v2046_v9 }
 0xce0   :  { %4764 = vmatprep.subr.mxu1 %v2045_v2 }
 0xce1   :  { %4765 = vmatpush3.msra.mxu1 %v2045_v2 }
 0xce2   :  { %4766 = vmatprep.subr.mxu1 %v2044_v10 }
 0xce3   :  { %4767 = vmatpush3.msra.mxu1 %v2044_v10 }
 0xce4   :  { %4768 = vmatprep.subr.mxu1 %v2043_v11 }
 0xce5   :  { %4769 = vmatpush3.msra.mxu1 %v2043_v11  ;;  %v4398_v11 = vld [vmem:[%s5897_s3 + $0x1] ss:$0 sm:$0xff] }
 0xce6   :  { %4770 = vmatprep.subr.mxu1 %v2042_v12 }
 0xce7   :  { %4771 = vmatpush3.msra.mxu1 %v2042_v12 }
 0xce8   :  { %4772 = vmatprep.subr.mxu1 %v2041_v13 }
 0xce9   :  { %4773 = vmatpush3.msra.mxu1 %v2041_v13 }
 0xcea   :  { %4774 = vmatprep.subr.mxu1 %v2040_v14 }
 0xceb   :  { %4775 = vmatpush3.msra.mxu1 %v2040_v14 }
 0xcec   :  { %4776 = vmatprep.subr.mxu1 %v2039_v15 }
 0xced   :  { %4777 = vmatpush3.msra.mxu1 %v2039_v15  ;;  %v4403_v15 = vld [vmem:[%s5899_s5 + $0x1] ss:$0 sm:$0xff] }
 0xcee   :  { %4778 = vmatprep.subr.mxu1 %v2038_v37 }
 0xcef   :  { %4779 = vmatpush3.msra.mxu1 %v2038_v37 }
 0xcf0   :  { %4780 = vmatprep.subr.mxu1 %v2037_v16 }
 0xcf1   :  { %4781 = vmatpush3.msra.mxu1 %v2037_v16 }
 0xcf2   :  { %4782 = vmatprep.subr.mxu1 %v2036_v17 }
 0xcf3   :  { %4783 = vmatpush3.msra.mxu1 %v2036_v17 }
 0xcf4   :  { %4784 = vmatprep.subr.mxu1 %v2035_v18 }
 0xcf5   :  { %4785 = vmatpush3.msra.mxu1 %v2035_v18 }
 0xcf6   :  { %4825 = vmatprep.subr.mxu1 %v5107_v34 }
 0xd96   :  { %v4742_v22 = vpop.f32.mrf.mxu1 }
 0xd97   :  { %v1879_v23 = vadd.f32 %v4742_v22, %v1462_v60 }
 0xd98   :  { %v1869_v25 = vpop.f32.mrf.mxu1 }
 0xd99   :  { %v1881_v26 = vadd.f32 %v1879_v23, %v5222_v1  ;;  %v1878_v27 = vadd.f32 %v1869_v25, %v1461_v62  ;;  %v4390_v62 = vld [vmem:[%s5903_s9] ss:$0 sm:$0xff] }
 0xd9b   :  { %v5452_v28 = vadd.f32 %v4388_v24, %v1881_v26  ;;  %v1880_v29 = vadd.f32 %v1878_v27, %v5217_v0 }
 0xd9d   :  { %v5455_v30 = vadd.f32 %v4388_v24, %v1880_v29  ;;  %v1894_v31 = vsel %vm81_vm0, %v5452_v28, 0.0 }
 0xd9e   :  { %1895 = vadd.xlane.f32.xlu0 %v1894_v31 }
 0xd9f   :  { %v1891_v32 = vsel %vm81_vm0, %v5455_v30, 0.0 }
 0xda0   :  { %1892 = vadd.xlane.f32.xlu1 %v1891_v32 }
 0xe27   :  { %v1896_v33 = vpop.xlane.xlu0 %1895 }
 0xe28   :  { %v1898_v35 = vmul.f32 0.03125, %v1896_v33 }
 0xe29   :  { %v1893_v36 = vpop.xlane.xlu1 %1892 }
 0xe2a   :  { %v1900_v1 = vsub.f32 %v5452_v28, %v1898_v35  ;;  %v1897_v38 = vmul.f32 0.03125, %v1893_v36 }
 0xe2c   :  { %v1899_v40 = vsub.f32 %v5455_v30, %v1897_v38  ;;  %v1902_v41 = vmul.f32 %v1900_v1, %v1900_v1  ;;  %v4396_v38 = vld [vmem:[%s5907_s13] ss:$0 sm:$0xff] }
 0xe2e   :  { %v1906_v0 = vsel %vm81_vm0, %v1902_v41, 0.0  ;;  %v1901_v42 = vmul.f32 %v1899_v40, %v1899_v40 }
 0xe2f   :  { %1907 = vadd.xlane.f32.xlu1 %v1906_v0 }
 0xe30   :  { %v1903_v43 = vsel %vm81_vm0, %v1901_v42, 0.0 }
 0xe31   :  { %1904 = vadd.xlane.f32.xlu0 %v1903_v43 }
 0xeb8   :  { %v1908_v50 = vpop.xlane.xlu1 %1907 }
 0xeb9   :  { %v1910_v51 = vmul.f32 0.03125, %v1908_v50 }
 0xeba   :  { %v1905_v52 = vpop.xlane.xlu0 %1904 }
 0xebb   :  { %v1912_v53 = vadd.f32 1e-05, %v1910_v51  ;;  %v1909_v54 = vmul.f32 0.03125, %v1905_v52 }
 0xebd   :  { %5008 = vrsqrt.f32 %v1912_v53  ;;  %v1911_v55 = vadd.f32 1e-05, %v1909_v54 }
 0xebf   :  { %5010 = vrsqrt.f32 %v1911_v55 }
 0xeca   :  { %v5009_v56 = vpop.eup %5008 }
 0xecb   :  { %v1916_v58 = vmul.f32 %v5009_v56, %v1900_v1 }
 0xecc   :  { %v5011_v59 = vpop.eup %5010 }
 0xecd   :  { %v1915_v60 = vmul.f32 %v5011_v59, %v1899_v40  ;;  %v1922_v61 = vmul.f32 %v4389_v57, %v1916_v58  ;;  %v4401_v58 = vld [vmem:[%s5898_s4 + $0x30] sm:$0xff]  ;;  %v4400_v59 = vld [vmem:[%s5898_s4 + $0x28] sm:$0xff] }
 0xecf   :  { %v1921_v3 = vmul.f32 %v4389_v57, %v1915_v60  ;;  %v1928_v5 = vadd.f32 %v4390_v62, %v1922_v61  ;;  %v4402_v57 = vld [vmem:[%s5898_s4 + $0x38] sm:$0xff]  ;;  %v4399_v60 = vld [vmem:[%s5898_s4 + $0x20] sm:$0xff] }
 0xed0   :  { %4789 = vmatprep.subr.mxu0 %v4402_v57 }
 0xed1   :  { %v1927_v4 = vadd.f32 %v4390_v62, %v1921_v3 }
 0xed3   :  { %4751 = vmatprep.mubr.msk.f32.mxu0 %vm81_vm0, %v1927_v4 }
 0xed4   :  { %4752 = vmatmul.mubr.msk.f32.vlgmr.msra.gmra.mxu0 %vm81_vm0, %v1928_v5 }
 0xed5   :  { %4790 = vmatpush3.msra.mxu0 %v4402_v57 }
 0xed6   :  { %4791 = vmatprep.subr.mxu0 %v4401_v58 }
 0xed7   :  { %4792 = vmatpush3.msra.mxu0 %v4401_v58 }
 0xed8   :  { %4793 = vmatprep.subr.mxu0 %v4400_v59 }
 0xed9   :  { %4794 = vmatpush3.msra.mxu0 %v4400_v59 }
 0xeda   :  { %4795 = vmatprep.subr.mxu0 %v4399_v60 }
 0xedb   :  { %4796 = vmatpush3.msra.mxu0 %v4399_v60 }
 0xedc   :  { %4800 = vmatprep.subr.mxu0 %v5107_v34 }
 0xf94   :  { %v4753_v19 = vpop.f32.mrf.mxu0 }
 0xf95   :  { %v2016_v20 = vadd.f32 %v4753_v19, %v4391_v39 }
 0xf96   :  { %v2010_v21 = vpop.f32.mrf.mxu0 }
 0xf97   :  { %v4395_v22 = vmul.f32 -1.702, %v2016_v20  ;;  %v2011_v23 = vadd.f32 %v4391_v39, %v2010_v21 }
 0xf99   :  { %v2025_v24 = vmul.f32 1.442695, %v4395_v22  ;;  %v4394_v25 = vmul.f32 -1.702, %v2011_v23 }
 0xf9b   :  { %5012 = vpow2.f32 %v2025_v24  ;;  %v2023_v26 = vmul.f32 1.442695, %v4394_v25 }
 0xf9d   :  { %5014 = vpow2.f32 %v2023_v26 }
 0xfa8   :  { %v5013_v27 = vpop.eup %5012 }
 0xfa9   :  { %v2028_v29 = vadd.f32 1.0, %v5013_v27 }
 0xfaa   :  { %v5015_v31 = vpop.eup %5014 }
 0xfab   :  { %v2027_v32 = vadd.f32 1.0, %v5015_v31  ;;  %5016 = vrcp.f32 %v2028_v29 }
 0xfad   :  { %5018 = vrcp.f32 %v2027_v32 }
 0xfb8   :  { %v5017_v33 = vpop.eup %5016 }
 0xfb9   :  { %v2034_v1 = vmul.f32 %v5017_v33, %v2016_v20 }
 0xfba   :  { %v5019_v35 = vpop.eup %5018 }
 0xfbb   :  { %v2033_v36 = vmul.f32 %v5019_v35, %v2011_v23 }
 0xfbd   :  { %4786 = vmatprep.mubr.f32.mxu1 %v2033_v36 }
 0xfbe   :  { %4787 = vmatmul.mubr.f32.vlgmr.msra.gmra.mxu1 %v2034_v1 }
 0xfbf   :  { %4827 = vmatprep.mubr.msk.f32.mxu1 %vm5108_vm1, %v5107_v34 }
0x107e   :  { %v4788_v40 = vpop.f32.mrf.mxu1 }
0x107f   :  { %v2128_v41 = vadd.f32 %v4788_v40, %v4396_v38 }
0x1080   :  { %v2122_v0 = vpop.f32.mrf.mxu1 }
0x1081   :  { %v5543_v42 = vadd.f32 %v2128_v41, %v5452_v28  ;;  %v2123_v43 = vadd.f32 %v4396_v38, %v2122_v0 }
0x1083   :  { %v5546_v45 = vadd.f32 %v2123_v43, %v5455_v30  ;;  %v2138_v47 = vsel %vm81_vm0, %v5543_v42, 0.0 }
0x1084   :  { %2139 = vadd.xlane.f32.xlu1 %v2138_v47 }
0x1085   :  { %v2135_v48 = vsel %vm81_vm0, %v5546_v45, 0.0 }
0x1086   :  { %2136 = vadd.xlane.f32.xlu0 %v2135_v48 }
0x110d   :  { %v2140_v49 = vpop.xlane.xlu1 %2139 }
0x110e   :  { %v2142_v50 = vmul.f32 0.03125, %v2140_v49 }
0x110f   :  { %v2137_v51 = vpop.xlane.xlu0 %2136 }
0x1110   :  { %v2144_v52 = vsub.f32 %v5543_v42, %v2142_v50  ;;  %v2141_v53 = vmul.f32 0.03125, %v2137_v51 }
0x1112   :  { %v2143_v28 = vsub.f32 %v5546_v45, %v2141_v53  ;;  %v2146_v54 = vmul.f32 %v2144_v52, %v2144_v52 }
0x1114   :  { %v2150_v30 = vsel %vm81_vm0, %v2146_v54, 0.0  ;;  %v2145_v55 = vmul.f32 %v2143_v28, %v2143_v28 }
0x1115   :  { %2151 = vadd.xlane.f32.xlu1 %v2150_v30 }
0x1116   :  { %v2147_v56 = vsel %vm81_vm0, %v2145_v55, 0.0 }
0x1117   :  { %2148 = vadd.xlane.f32.xlu0 %v2147_v56 }
0x119e   :  { %v2152_v61 = vpop.xlane.xlu1 %2151 }
0x119f   :  { %v2154_v62 = vmul.f32 0.03125, %v2152_v61 }
0x11a0   :  { %v2149_v3 = vpop.xlane.xlu0 %2148 }
0x11a1   :  { %v2156_v4 = vadd.f32 1e-05, %v2154_v62  ;;  %v2153_v5 = vmul.f32 0.03125, %v2149_v3 }
0x11a3   :  { %5020 = vrsqrt.f32 %v2156_v4  ;;  %v2155_v6 = vadd.f32 1e-05, %v2153_v5 }
0x11a5   :  { %5022 = vrsqrt.f32 %v2155_v6 }
0x11b0   :  { %v5021_v7 = vpop.eup %5020 }
0x11b1   :  { %v2160_v8 = vmul.f32 %v5021_v7, %v2144_v52 }
0x11b2   :  { %v5023_v9 = vpop.eup %5022 }
0x11b3   :  { %v2159_v2 = vmul.f32 %v5023_v9, %v2143_v28  ;;  %v2166_v10 = vmul.f32 %v4397_v63, %v2160_v8 }
0x11b5   :  { %v2165_v12 = vmul.f32 %v4397_v63, %v2159_v2  ;;  %v2172_v14 = vadd.f32 %v4398_v11, %v2166_v10 }
0x11b7   :  { %v2171_v13 = vadd.f32 %v4398_v11, %v2165_v12 }
0x11b9   :  { %4797 = vmatprep.mubr.msk.f32.mxu0 %vm81_vm0, %v2171_v13 }
0x11ba   :  { %4798 = vmatmul.mubr.msk.f32.vlgmr.msra.gmra.mxu0 %vm81_vm0, %v2172_v14 }
0x11bb   :  { %4802 = vmatprep.mubr.msk.f32.mxu0 %vm5108_vm1, %v5107_v34 }
0x127a   :  { %v4799_v37 = vpop.f32.mrf.mxu0 }
0x127b   :  { %v5582_v16 = vadd.f32 %v4799_v37, %v4403_v15 }
0x127c   :  { %v2255_v17 = vpop.f32.mrf.mxu0 }
0x127d   :  { %v5584_v18 = vadd.f32 %v4403_v15, %v2255_v17  ;;  %2347 = vrot.lane.b32.xlu1 %v5582_v16, %s5109_s1 }
0x127f   :  { %2270 = vrot.lane.b32.xlu0 %v5584_v18, %s5109_s1 }
0x12ef   :  { %v2348_v19 = vpop.permute.xlu1 %2347 }
0x12f1   :  { %v2271_v39 = vpop.permute.xlu0 %2270 }
0x12f2   :  { %4801 = vmatpush3.xpose.msk.msra.mxu0 %vm218_vm2, %v2271_v39 }
0x12f3   :  { %4805 = vmatprep.subr.mxu0 %v5107_v34 }
0x12f5   :  { %4803 = vmatmul.mubr.msk.f32.vlgmr.msra.gmra.mxu0 %vm218_vm2, %v5584_v18 }
0x12f6   :  { %4806 = vmatpush3.xpose.msk.msra.mxu0 %vm218_vm2, %v2348_v19  ;;  %4807 = vmatprep.mubr.msk.f32.mxu0 %vm5108_vm1, %v5107_v34 }
0x12f7   :  { %4810 = vmatprep.subr.mxu0 %v5107_v34 }
0x12f9   :  { %4808 = vmatmul.mubr.msk.f32.vlgmr.msra.gmra.mxu0 %vm218_vm2, %v5582_v16 }
0x12fa   :  { %4812 = vmatprep.mubr.msk.f32.mxu0 %vm5108_vm1, %v5107_v34 }
0x13b5   :  { %v2342_v20 = vpop.f32.mrf.mxu0 }
0x13b6   :  { %v2423_v21 = vmul.f32 0.35355338, %v2342_v20  ;;  %v4406_v20 = vld [vmem:[%s5900_s6 + $0x20] sm:$0xff] }
0x13b7   :  { %v4804_v22 = vpop.f32.mrf.mxu0 }
0x13b8   :  { %v2425_v23 = vsel %vm5284_vm5, %v2423_v21, -1e+30 }
0x13b9   :  { %v2419_v24 = vpop.f32.mrf.mxu0  ;;  %v2427_v25 = vsel %vm218_vm2, %v2425_v23, -inf }
0x13ba   :  { %v2424_v26 = vmul.f32 0.35355338, %v2419_v24  ;;  %2428 = vmax.xlane.f32.xlu1 %v2427_v25 }
0x13bb   :  { %v4809_v27 = vpop.f32.mrf.mxu0 }
0x13bc   :  { %v2426_v29 = vsel %vm5284_vm5, %v2424_v26, -1e+30 }
0x13bd   :  { %v2430_v31 = vsel %vm218_vm2, %v2426_v29, -inf }
0x13be   :  { %2431 = vmax.xlane.f32.xlu0 %v2430_v31 }
0x13cb   :  { %2525 = vrot.lane.b32.xlu1 %v5582_v16, %s5110_s20 }
0x13cf   :  { %2603 = vrot.lane.b32.xlu1 %v5584_v18, %s5111_s21 }
0x13d3   :  { %2681 = vrot.lane.b32.xlu1 %v5582_v16, %s5111_s21  ;;  %s5927_s21 = smov 48  }
0x1443   :  { %v2429_v32 = vpop.xlane.xlu1 %2428 }
0x1444   :  { %v2433_v33 = vsub.f32 %v2425_v23, %v2429_v32 }
0x1446   :  { %v2435_v35 = vmul.f32 1.442695, %v2433_v33  ;;  %v4407_v33 = vld [vmem:[%s5900_s6 + $0x28] sm:$0xff] }
0x1447   :  { %v2526_v36 = vpop.permute.xlu1 %2525  ;;  %v2432_v1 = vpop.xlane.xlu0 %2431 }
0x1448   :  { %5024 = vpow2.f32 %v2435_v35  ;;  %v2434_v38 = vsub.f32 %v2426_v29, %v2432_v1 }
0x144a   :  { %v2437_v40 = vmul.f32 1.442695, %v2434_v38 }
0x144b   :  { %v2604_v41 = vpop.permute.xlu1 %2603 }
0x144c   :  { %5026 = vpow2.f32 %v2437_v40 }
0x144f   :  { %v2682_v0 = vpop.permute.xlu1 %2681 }
0x1450   :  { %4826 = vmatpush3.xpose.msk.msra.mxu1 %vm218_vm2, %v2682_v0 }
0x1451   :  { %4835 = vmatprep.subr.mxu1 %v5107_v34 }
0x1455   :  { %v5025_v43 = vpop.eup %5024 }
0x1456   :  { %v2439_v47 = vsel %vm218_vm2, %v5025_v43, 0.0 }
0x1457   :  { %2440 = vadd.xlane.f32.xlu0 %v2439_v47 }
0x1459   :  { %v5027_v48 = vpop.eup %5026 }
0x145a   :  { %v2442_v49 = vsel %vm218_vm2, %v5027_v48, 0.0 }
0x145b   :  { %2443 = vadd.xlane.f32.xlu1 %v2442_v49 }
0x146c   :  { %2679 = vrot.lane.b32.xlu1 %v5582_v16, %s5112_s22 }
0x146d   :  { %2449 = vrot.lane.b32.xlu0 %v5584_v18, %s5110_s20 }
0x1471   :  { %2601 = vrot.lane.b32.xlu0 %v5584_v18, %s5112_s22  ;;  %s5928_s22 = smov 72  }
0x14e0   :  { %v2441_v50 = vpop.xlane.xlu0 %2440 }
0x14e1   :  { %5028 = vrcp.f32 %v2441_v50 }
0x14e4   :  { %v2444_v51 = vpop.xlane.xlu1 %2443  ;;  %v2450_v52 = vpop.permute.xlu0 %2449 }
0x14e5   :  { %5030 = vrcp.f32 %v2444_v51  ;;  %4811 = vmatpush3.msra.mxu0 %v2450_v52 }
0x14e6   :  { %4815 = vmatprep.subr.mxu0 %v5107_v34 }
0x14e8   :  { %v2680_v53 = vpop.permute.xlu1 %2679  ;;  %v2602_v56 = vpop.permute.xlu0 %2601 }
0x14e9   :  { %4828 = vmatmul.mubr.msk.f32.vlgmr.msra.gmra.mxu1 %vm218_vm2, %v2680_v53 }
0x14ea   :  { %4837 = vmatprep.mubr.msk.f32.mxu1 %vm5108_vm1, %v5107_v34 }
0x14ee   :  { %v5029_v28 = vpop.eup %5028 }
0x14ef   :  { %v2447_v54 = vmul.f32 %v5029_v28, %v5025_v43 }
0x14f1   :  { %4813 = vmatmul.mubr.msk.f32.vlgmr.msra.gmra.mxu0 %vm218_vm2, %v2447_v54 }
0x14f2   :  { %v5031_v30 = vpop.eup %5030  ;;  %4816 = vmatpush3.msra.mxu0 %v2526_v36  ;;  %4817 = vmatprep.mubr.msk.f32.mxu0 %vm5108_vm1, %v5107_v34 }
0x14f3   :  { %4820 = vmatprep.subr.mxu0 %v5107_v34  ;;  %v2448_v55 = vmul.f32 %v5031_v30, %v5027_v48 }
0x14f5   :  { %4818 = vmatmul.mubr.msk.f32.vlgmr.msra.gmra.mxu0 %vm218_vm2, %v2448_v55 }
0x14f6   :  { %4821 = vmatpush3.xpose.msk.msra.mxu0 %vm218_vm2, %v2604_v41  ;;  %4822 = vmatprep.mubr.msk.f32.mxu0 %vm5108_vm1, %v5107_v34 }
0x14f7   :  { %4830 = vmatprep.subr.mxu0 %v5107_v34 }
0x14f9   :  { %4823 = vmatmul.mubr.msk.f32.vlgmr.msra.gmra.mxu0 %vm218_vm2, %v2602_v56 }
0x14fa   :  { %4832 = vmatprep.mubr.msk.f32.mxu0 %vm5108_vm1, %v5107_v34 }
0x15a9   :  { %v2753_v57 = vpop.f32.mrf.mxu1 }
0x15aa   :  { %v2758_v58 = vmul.f32 0.35355338, %v2753_v57 }
0x15ab   :  { %v4829_v59 = vpop.f32.mrf.mxu1 }
0x15ac   :  { %v2760_v60 = vsel %vm5284_vm5, %v2758_v58, -1e+30 }
0x15ad   :  { %v2764_v61 = vsel %vm218_vm2, %v2760_v60, -inf }
0x15ae   :  { %2765 = vmax.xlane.f32.xlu1 %v2764_v61 }
0x15b1   :  { %v2521_v62 = vpop.f32.mrf.mxu0 }
0x15b3   :  { %v4814_v3 = vpop.f32.mrf.mxu0 }
0x15b5   :  { %v2597_v4 = vpop.f32.mrf.mxu0 }
0x15b7   :  { %v4819_v5 = vpop.f32.mrf.mxu0 }
0x15b9   :  { %v2675_v6 = vpop.f32.mrf.mxu0 }
0x15ba   :  { %v2757_v7 = vmul.f32 0.35355338, %v2675_v6 }
0x15bb   :  { %v4824_v63 = vpop.f32.mrf.mxu0 }
0x15bc   :  { %v2759_v8 = vsel %vm5284_vm5, %v2757_v7, -1e+30 }
0x15bd   :  { %v2761_v9 = vsel %vm218_vm2, %v2759_v8, -inf }
0x15be   :  { %2762 = vmax.xlane.f32.xlu0 %v2761_v9 }
0x15bf   :  { %2859 = vrot.lane.b32.xlu1 %v5582_v16, %s5113_s23 }
0x15c3   :  { %3099 = vrot.lane.b32.xlu1 %v5584_v18, %s5114_s24 }
0x15c7   :  { %3177 = vrot.lane.b32.xlu1 %v5582_v16, %s5114_s24 }
0x15cb   :  { %3175 = vrot.lane.b32.xlu1 %v5582_v16, %s5115_s25 }
0x1637   :  { %v2766_v2 = vpop.xlane.xlu1 %2765 }
0x1638   :  { %v2768_v10 = vsub.f32 %v2760_v60, %v2766_v2 }
0x163a   :  { %v2771_v11 = vmul.f32 1.442695, %v2768_v10 }
0x163b   :  { %v2860_v12 = vpop.permute.xlu1 %2859 }
0x163c   :  { %5032 = vpow2.f32 %v2771_v11  ;;  %4836 = vmatpush3.msra.mxu1 %v2860_v12 }
0x163d   :  { %4845 = vmatprep.subr.mxu1 %v4406_v20 }
0x163f   :  { %v3100_v22 = vpop.permute.xlu1 %3099 }
0x1643   :  { %v3178_v26 = vpop.permute.xlu1 %3177 }
0x1647   :  { %v2763_v13 = vpop.xlane.xlu0 %2762  ;;  %v3176_v29 = vpop.permute.xlu1 %3175 }
0x1648   :  { %v2767_v14 = vsub.f32 %v2759_v8, %v2763_v13 }
0x1649   :  { %v5033_v15 = vpop.eup %5032 }
0x164a   :  { %v2769_v37 = vmul.f32 1.442695, %v2767_v14  ;;  %v2776_v17 = vsel %vm218_vm2, %v5033_v15, 0.0 }
0x164b   :  { %2777 = vadd.xlane.f32.xlu0 %v2776_v17 }
0x164c   :  { %5034 = vpow2.f32 %v2769_v37  ;;  %v4408_v37 = vld [vmem:[%s5900_s6 + $0x30] sm:$0xff] }
0x1659   :  { %v5035_v39 = vpop.eup %5034 }
0x165a   :  { %v2773_v19 = vsel %vm218_vm2, %v5035_v39, 0.0 }
0x165b   :  { %2774 = vadd.xlane.f32.xlu0 %v2773_v19 }
0x1671   :  { %2783 = vrot.lane.b32.xlu0 %v5584_v18, %s5113_s23  ;;  %s5929_s23 = smov 104  }
0x1675   :  { %3097 = vrot.lane.b32.xlu0 %v5584_v18, %s5115_s25 }
0x16d4   :  { %v2778_v21 = vpop.xlane.xlu0 %2777 }
0x16d5   :  { %5036 = vrcp.f32 %v2778_v21 }
0x16e2   :  { %v5037_v23 = vpop.eup %5036 }
0x16e3   :  { %v2782_v24 = vmul.f32 %v5037_v23, %v5033_v15 }
0x16e4   :  { %v2775_v25 = vpop.xlane.xlu0 %2774 }
0x16e5   :  { %5038 = vrcp.f32 %v2775_v25  ;;  %4838 = vmatmul.mubr.msk.f32.vlgmr.msra.gmra.mxu1 %vm218_vm2, %v2782_v24 }
0x16e6   :  { %4847 = vmatprep.mubr.msk.f32.mxu1 %vm218_vm2, %v2521_v62  ;;  %4846 = vmatpush3.msra.mxu1 %v4406_v20 }
0x16e7   :  { %4855 = vmatprep.subr.mxu1 %v5107_v34 }
0x16e8   :  { %v2784_v27 = vpop.permute.xlu0 %2783 }
0x16e9   :  { %4831 = vmatpush3.msra.mxu0 %v2784_v27  ;;  %4848 = vmatmul.mubr.msk.f32.vlgmr.msra.gmra.mxu1 %vm218_vm2, %v2597_v4 }
0x16ea   :  { %4856 = vmatpush3.xpose.msk.msra.mxu1 %vm218_vm2, %v3178_v26  ;;  %4857 = vmatprep.mubr.msk.f32.mxu1 %vm5108_vm1, %v5107_v34 }
0x16eb   :  { %4865 = vmatprep.subr.mxu1 %v5107_v34  ;;  %4840 = vmatprep.subr.mxu0 %v4407_v33 }
0x16ec   :  { %v3098_v50 = vpop.permute.xlu0 %3097 }
0x16ed   :  { %4858 = vmatmul.mubr.msk.f32.vlgmr.msra.gmra.mxu1 %vm218_vm2, %v3176_v29 }
0x16ee   :  { %4867 = vmatprep.mubr.msk.f32.mxu1 %vm5108_vm1, %v5107_v34 }
0x16f2   :  { %v5039_v31 = vpop.eup %5038 }
0x16f3   :  { %v2781_v32 = vmul.f32 %v5039_v31, %v5035_v39 }
0x16f5   :  { %4833 = vmatmul.mubr.msk.f32.vlgmr.msra.gmra.mxu0 %vm218_vm2, %v2781_v32 }
0x16f6   :  { %4841 = vmatpush3.msra.mxu0 %v4407_v33 }
0x16f7   :  { %4850 = vmatprep.subr.mxu0 %v5107_v34 }
0x17a5   :  { %v2931_v35 = vpop.f32.mrf.mxu1 }
0x17a7   :  { %v4839_v36 = vpop.f32.mrf.mxu1 }
0x17a9   :  { %v5679_v1 = vpop.f32.mrf.mxu1 }
0x17ab   :  { %v5681_v38 = vpop.f32.mrf.mxu1 }
0x17ad   :  { %v3249_v40 = vpop.f32.mrf.mxu1 }
0x17ae   :  { %v3254_v41 = vmul.f32 0.35355338, %v3249_v40 }
0x17af   :  { %v4859_v0 = vpop.f32.mrf.mxu1 }
0x17b0   :  { %v3256_v43 = vsel %vm5284_vm5, %v3254_v41, -1e+30 }
0x17b1   :  { %v3260_v47 = vsel %vm218_vm2, %v3256_v43, -inf }
0x17b2   :  { %3261 = vmax.xlane.f32.xlu1 %v3260_v47 }
0x17b5   :  { %v2855_v48 = vpop.f32.mrf.mxu0 }
0x17b6   :  { %4842 = vmatprep.mubr.msk.f32.mxu0 %vm218_vm2, %v2855_v48 }
0x17b7   :  { %v4834_v49 = vpop.f32.mrf.mxu0  ;;  %4843 = vmatmul.mubr.msk.f32.vlgmr.msra.gmra.mxu0 %vm218_vm2, %v2931_v35 }
0x17b8   :  { %4851 = vmatpush3.xpose.msk.msra.mxu0 %vm218_vm2, %v3100_v22  ;;  %4852 = vmatprep.mubr.msk.f32.mxu0 %vm5108_vm1, %v5107_v34 }
0x17b9   :  { %4860 = vmatprep.subr.mxu0 %v5107_v34 }
0x17bb   :  { %4853 = vmatmul.mubr.msk.f32.vlgmr.msra.gmra.mxu0 %vm218_vm2, %v3098_v50 }
0x17bc   :  { %4862 = vmatprep.mubr.msk.f32.mxu0 %vm5108_vm1, %v5107_v34 }
0x17c3   :  { %3355 = vrot.lane.b32.xlu1 %v5582_v16, %s5927_s21 }
0x17c7   :  { %3516 = vrot.lane.b32.xlu1 %v5584_v18, %s5928_s22 }
0x17cb   :  { %3594 = vrot.lane.b32.xlu1 %v5582_v16, %s5928_s22 }
0x17cf   :  { %3592 = vrot.lane.b32.xlu1 %v5582_v16, %s5929_s23 }
0x183b   :  { %v3262_v51 = vpop.xlane.xlu1 %3261 }
0x183c   :  { %v3264_v53 = vsub.f32 %v3256_v43, %v3262_v51 }
0x183e   :  { %v3267_v28 = vmul.f32 1.442695, %v3264_v53 }
0x183f   :  { %v3356_v52 = vpop.permute.xlu1 %3355 }
0x1840   :  { %4866 = vmatpush3.msra.mxu1 %v3356_v52  ;;  %5040 = vpow2.f32 %v3267_v28 }
0x1841   :  { %4875 = vmatprep.subr.mxu1 %v5107_v34 }
0x1843   :  { %v3517_v9 = vpop.permute.xlu1 %3516 }
0x1847   :  { %v3595_v22 = vpop.permute.xlu1 %3594 }
0x184b   :  { %v3593_v25 = vpop.permute.xlu1 %3592 }
0x184d   :  { %v5041_v60 = vpop.eup %5040 }
0x184e   :  { %v3272_v61 = vsel %vm218_vm2, %v5041_v60, 0.0 }
0x1877   :  { %v5704_v54 = vpop.f32.mrf.mxu0 }
0x1878   :  { %v3094_v33 = vadd.f32 %v5679_v1, %v5704_v54 }
0x1879   :  { %v5706_v30 = vpop.f32.mrf.mxu0 }
0x187a   :  { %v3089_v36 = vadd.f32 %v5681_v38, %v5706_v30 }
0x187b   :  { %v3171_v55 = vpop.f32.mrf.mxu0 }
0x187c   :  { %v3253_v56 = vmul.f32 0.35355338, %v3171_v55 }
0x187d   :  { %v4854_v57 = vpop.f32.mrf.mxu0 }
0x187e   :  { %v3255_v58 = vsel %vm5284_vm5, %v3253_v56, -1e+30 }
0x187f   :  { %v3257_v59 = vsel %vm218_vm2, %v3255_v58, -inf }
0x1880   :  { %3258 = vmax.xlane.f32.xlu0 %v3257_v59 }
0x1884   :  { %3273 = vadd.xlane.f32.xlu0 %v3272_v61 }
0x1909   :  { %v3259_v62 = vpop.xlane.xlu0 %3258 }
0x190a   :  { %v3263_v3 = vsub.f32 %v3255_v58, %v3259_v62  ;;  %v4409_v58 = vld [vmem:[%s5900_s6 + $0x38] sm:$0xff] }
0x190c   :  { %v3265_v4 = vmul.f32 1.442695, %v3263_v3 }
0x190d   :  { %v3274_v5 = vpop.xlane.xlu0 %3273 }
0x190e   :  { %5042 = vpow2.f32 %v3265_v4  ;;  %v4442_v4 = vld [vmem:[%s5901_s7 + $0x1] ss:$0 sm:$0xff] }
0x190f   :  { %5044 = vrcp.f32 %v3274_v5 }
0x191b   :  { %v5043_v6 = vpop.eup %5042 }
0x191c   :  { %v5045_v7 = vpop.eup %5044  ;;  %v3269_v63 = vsel %vm218_vm2, %v5043_v6, 0.0 }
0x191d   :  { %3270 = vadd.xlane.f32.xlu0 %v3269_v63  ;;  %v3278_v8 = vmul.f32 %v5045_v7, %v5041_v60 }
0x191f   :  { %4868 = vmatmul.mubr.msk.f32.vlgmr.msra.gmra.mxu1 %vm218_vm2, %v3278_v8 }
0x1920   :  { %4876 = vmatpush3.xpose.msk.msra.mxu1 %vm218_vm2, %v3517_v9  ;;  %4877 = vmatprep.mubr.msk.f32.mxu1 %vm5108_vm1, %v5107_v34 }
0x1921   :  { %4885 = vmatprep.subr.mxu1 %v5107_v34 }
0x1933   :  { %3279 = vrot.lane.b32.xlu0 %v5584_v18, %s5927_s21 }
0x1937   :  { %3514 = vrot.lane.b32.xlu0 %v5584_v18, %s5929_s23 }
0x19a6   :  { %v3271_v2 = vpop.xlane.xlu0 %3270 }
0x19a7   :  { %5046 = vrcp.f32 %v3271_v2 }
0x19aa   :  { %v3280_v10 = vpop.permute.xlu0 %3279 }
0x19ab   :  { %4861 = vmatpush3.msra.mxu0 %v3280_v10 }
0x19ac   :  { %4870 = vmatprep.subr.mxu0 %v4408_v37 }
0x19ae   :  { %v3515_v11 = vpop.permute.xlu0 %3514 }
0x19af   :  { %4878 = vmatmul.mubr.msk.f32.vlgmr.msra.gmra.mxu1 %vm218_vm2, %v3515_v11 }
0x19b0   :  { %4887 = vmatprep.mubr.msk.f32.mxu1 %vm5108_vm1, %v5107_v34 }
0x19b4   :  { %v5047_v12 = vpop.eup %5046 }
0x19b5   :  { %v3277_v13 = vmul.f32 %v5047_v12, %v5043_v6 }
0x19b7   :  { %4863 = vmatmul.mubr.msk.f32.vlgmr.msra.gmra.mxu0 %vm218_vm2, %v3277_v13 }
0x19b8   :  { %4871 = vmatpush3.msra.mxu0 %v4408_v37 }
0x19b9   :  { %4880 = vmatprep.subr.mxu0 %v5107_v34 }
0x19df   :  { %v3427_v14 = vpop.f32.mrf.mxu1 }
0x19e1   :  { %v4869_v15 = vpop.f32.mrf.mxu1 }
0x1a6f   :  { %v3588_v17 = vpop.f32.mrf.mxu1 }
0x1a70   :  { %v3670_v39 = vmul.f32 0.35355338, %v3588_v17 }
0x1a71   :  { %v4879_v19 = vpop.f32.mrf.mxu1 }
0x1a72   :  { %v3672_v20 = vsel %vm5284_vm5, %v3670_v39, -1e+30  ;;  %v4448_v19 = vld [vmem:[%s5904_s10 + $0x38] sm:$0xff] }
0x1a73   :  { %v3674_v21 = vsel %vm218_vm2, %v3672_v20, -inf }
0x1a74   :  { %3675 = vmax.xlane.f32.xlu0 %v3674_v21  ;;  %v4446_v21 = vld [vmem:[%s5904_s10 + $0x28] sm:$0xff] }
0x1a77   :  { %v3351_v23 = vpop.f32.mrf.mxu0 }
0x1a78   :  { %4872 = vmatprep.mubr.msk.f32.mxu0 %vm218_vm2, %v3351_v23 }
0x1a79   :  { %v4864_v24 = vpop.f32.mrf.mxu0  ;;  %4873 = vmatmul.mubr.msk.f32.vlgmr.msra.gmra.mxu0 %vm218_vm2, %v3427_v14 }
0x1a7a   :  { %4881 = vmatpush3.xpose.msk.msra.mxu0 %vm218_vm2, %v3595_v22  ;;  %4882 = vmatprep.mubr.msk.f32.mxu0 %vm5108_vm1, %v5107_v34  ;;  %v4445_v22 = vld [vmem:[%s5904_s10 + $0x20] sm:$0xff] }
0x1a7b   :  { %4890 = vmatprep.subr.mxu0 %v5107_v34 }
0x1a7d   :  { %4883 = vmatmul.mubr.msk.f32.vlgmr.msra.gmra.mxu0 %vm218_vm2, %v3593_v25 }
0x1a7e   :  { %4892 = vmatprep.mubr.msk.f32.mxu0 %vm5108_vm1, %v5107_v34 }
0x1afd   :  { %v3676_v26 = vpop.xlane.xlu0 %3675 }
0x1afe   :  { %v3680_v27 = vsub.f32 %v3672_v20, %v3676_v26  ;;  %v4447_v20 = vld [vmem:[%s5904_s10 + $0x30] sm:$0xff] }
0x1b00   :  { %v3682_v29 = vmul.f32 1.442695, %v3680_v27 }
0x1b02   :  { %5048 = vpow2.f32 %v3682_v29 }
0x1b0f   :  { %v5049_v31 = vpop.eup %5048 }
0x1b10   :  { %v3686_v32 = vsel %vm218_vm2, %v5049_v31, 0.0 }
0x1b11   :  { %3687 = vadd.xlane.f32.xlu0 %v3686_v32  ;;  %v4443_v32 = vld [vmem:[%s5902_s8 + $0x1] ss:$0 sm:$0xff] }
0x1b39   :  { %v4874_v35 = vpop.f32.mrf.mxu0 }
0x1b3a   :  { %v3513_v40 = vadd.f32 %v4874_v35, %v3094_v33 }
0x1b3b   :  { %v3503_v41 = vpop.f32.mrf.mxu0 }
0x1b3c   :  { %v3512_v0 = vadd.f32 %v3503_v41, %v3089_v36  ;;  %v4444_v41 = vld [vmem:[%s5903_s9 + $0x1] ss:$0 sm:$0xff] }
0x1b3d   :  { %v3666_v43 = vpop.f32.mrf.mxu0 }
0x1b3e   :  { %v3671_v47 = vmul.f32 0.35355338, %v3666_v43 }
0x1b3f   :  { %v4884_v48 = vpop.f32.mrf.mxu0 }
0x1b40   :  { %v3673_v49 = vsel %vm5284_vm5, %v3671_v47, -1e+30  ;;  %v4469_v48 = vld [vmem:[%s5906_s12 + $0xf8] sm:$0xff] }
0x1b41   :  { %v3677_v50 = vsel %vm218_vm2, %v3673_v49, -inf }
0x1b42   :  { %3678 = vmax.xlane.f32.xlu1 %v3677_v50  ;;  %v4467_v50 = vld [vmem:[%s5906_s12 + $0xe8] sm:$0xff] }
0x1b53   :  { %3772 = vrot.lane.b32.xlu1 %v5582_v16, %s5930_s28 }
0x1b9a   :  { %v3688_v46 = vpop.xlane.xlu0 %3687 }
0x1bcb   :  { %v3679_v1 = vpop.xlane.xlu1 %3678 }
0x1bcc   :  { %v3681_v51 = vsub.f32 %v3673_v49, %v3679_v1  ;;  %v4468_v49 = vld [vmem:[%s5906_s12 + $0xf0] sm:$0xff]  ;;  %v4466_v1 = vld [vmem:[%s5906_s12 + $0xe0] sm:$0xff] }
0x1bce   :  { %v3684_v52 = vmul.f32 1.442695, %v3681_v51  ;;  %v4465_v51 = vld [vmem:[%s5906_s12 + $0xd8] sm:$0xff] }
0x1bcf   :  { %v3773_v53 = vpop.permute.xlu1 %3772 }
0x1bd0   :  { %5050 = vpow2.f32 %v3684_v52  ;;  %4891 = vmatpush3.msra.mxu0 %v3773_v53  ;;  %v4464_v52 = vld [vmem:[%s5906_s12 + $0xd0] sm:$0xff]  ;;  %v4463_v53 = vld [vmem:[%s5906_s12 + $0xc8] sm:$0xff] }
0x1bd1   :  { %5052 = vrcp.f32 %v3688_v46  ;;  %4900 = vmatprep.subr.mxu0 %v4448_v19  ;;  %v4460_v46 = vld [vmem:[%s5906_s12 + $0xb0] sm:$0xff] }
0x1bdd   :  { %v5051_v38 = vpop.eup %5050 }
0x1bde   :  { %v3689_v28 = vsel %vm218_vm2, %v5051_v38, 0.0  ;;  %v5053_v30 = vpop.eup %5052 }
0x1bdf   :  { %3690 = vadd.xlane.f32.xlu0 %v3689_v28  ;;  %v3694_v16 = vmul.f32 %v5053_v30, %v5049_v31  ;;  %v4461_v28 = vld [vmem:[%s5906_s12 + $0xb8] sm:$0xff]  ;;  %v4458_v30 = vld [vmem:[%s5906_s12 + $0xa0] sm:$0xff] }
0x1bf5   :  { %3696 = vrot.lane.b32.xlu0 %v5584_v18, %s5930_s28 }
0x1c68   :  { %v3691_v54 = vpop.xlane.xlu0 %3690 }
0x1c69   :  { %5054 = vrcp.f32 %v3691_v54  ;;  %v4459_v54 = vld [vmem:[%s5906_s12 + $0xa8] sm:$0xff] }
0x1c6c   :  { %v3697_v55 = vpop.permute.xlu0 %3696 }
0x1c6d   :  { %4886 = vmatpush3.msra.mxu1 %v3697_v55  ;;  %v4457_v55 = vld [vmem:[%s5906_s12 + $0x98] sm:$0xff] }
0x1c6e   :  { %4888 = vmatmul.mubr.msk.f32.vlgmr.msra.gmra.mxu1 %vm218_vm2, %v3694_v16  ;;  %4895 = vmatprep.subr.mxu1 %v4409_v58  ;;  %v4456_v16 = vld [vmem:[%s5906_s12 + $0x90] sm:$0xff] }
0x1c6f   :  { %4896 = vmatpush3.msra.mxu1 %v4409_v58  ;;  %v4449_v58 = vld [vmem:[%s5905_s11 + $0x1] ss:$0 sm:$0xff]  ;;  %s4473_s11 = sld [smem:[#allocation2 + $0x1]] }
0x1c70   :  { %4911 = vmatprep.subr.mxu1 %v4469_v48 }
0x1c75   :  { %s4207_s26 = sadd.s32 8, %s4473_s11 }
0x1c76   :  { %v5055_v56 = vpop.eup %5054 }
0x1c77   :  { %v3695_v57 = vmul.f32 %v5055_v56, %v5051_v38  ;;  %v4462_v38 = vld [vmem:[%s5906_s12 + $0xc0] sm:$0xff]  ;;  %v4455_v56 = vld [vmem:[%s5906_s12 + $0x88] sm:$0xff] }
0x1c79   :  { %4893 = vmatmul.mubr.msk.f32.vlgmr.msra.gmra.mxu0 %vm218_vm2, %v3695_v57  ;;  %v4454_v57 = vld [vmem:[%s5906_s12 + $0x80] sm:$0xff]  ;;  %s4187_s12 = sld [smem:[#allocation2]] }
0x1c7a   :  { %4901 = vmatpush3.msra.mxu0 %v4448_v19 }
0x1c7b   :  { %4902 = vmatprep.subr.mxu0 %v4447_v20 }
0x1c7c   :  { %4903 = vmatpush3.msra.mxu0 %v4447_v20 }
0x1c7d   :  { %4904 = vmatprep.subr.mxu0 %v4446_v21 }
0x1c7e   :  { %4905 = vmatpush3.msra.mxu0 %v4446_v21 }
0x1c7f   :  { %4906 = vmatprep.subr.mxu0 %v4445_v22 }
0x1c80   :  { %4907 = vmatpush3.msra.mxu0 %v4445_v22 }
0x1c81   :  { %4946 = vmatprep.subr.mxu0 %v5107_v34 }
0x1d2e   :  { %v3768_v18 = vpop.f32.mrf.mxu1 }
0x1d2f   :  { %4897 = vmatprep.mubr.msk.f32.mxu1 %vm218_vm2, %v3768_v18 }
0x1d30   :  { %v4889_v59 = vpop.f32.mrf.mxu1 }
0x1d39   :  { %v3844_v60 = vpop.f32.mrf.mxu0 }
0x1d3a   :  { %4898 = vmatmul.mubr.msk.f32.vlgmr.msra.gmra.mxu1 %vm218_vm2, %v3844_v60 }
0x1d3b   :  { %v4894_v61 = vpop.f32.mrf.mxu0  ;;  %4912 = vmatpush3.msra.mxu1 %v4469_v48 }
0x1d3c   :  { %4913 = vmatprep.subr.mxu1 %v4468_v49 }
0x1d3d   :  { %4914 = vmatpush3.msra.mxu1 %v4468_v49 }
0x1d3e   :  { %4915 = vmatprep.subr.mxu1 %v4467_v50 }
0x1d3f   :  { %4916 = vmatpush3.msra.mxu1 %v4467_v50 }
0x1d40   :  { %4917 = vmatprep.subr.mxu1 %v4466_v1 }
0x1d41   :  { %4918 = vmatpush3.msra.mxu1 %v4466_v1 }
0x1d42   :  { %4919 = vmatprep.subr.mxu1 %v4465_v51 }
0x1d43   :  { %4920 = vmatpush3.msra.mxu1 %v4465_v51 }
0x1d44   :  { %4921 = vmatprep.subr.mxu1 %v4464_v52 }
0x1d45   :  { %4922 = vmatpush3.msra.mxu1 %v4464_v52 }
0x1d46   :  { %4923 = vmatprep.subr.mxu1 %v4463_v53 }
0x1d47   :  { %4924 = vmatpush3.msra.mxu1 %v4463_v53 }
0x1d48   :  { %4925 = vmatprep.subr.mxu1 %v4462_v38 }
0x1d49   :  { %4926 = vmatpush3.msra.mxu1 %v4462_v38 }
0x1d4a   :  { %4927 = vmatprep.subr.mxu1 %v4461_v28 }
0x1d4b   :  { %4928 = vmatpush3.msra.mxu1 %v4461_v28 }
0x1d4c   :  { %4929 = vmatprep.subr.mxu1 %v4460_v46 }
0x1d4d   :  { %4930 = vmatpush3.msra.mxu1 %v4460_v46 }
0x1d4e   :  { %4931 = vmatprep.subr.mxu1 %v4459_v54 }
0x1d4f   :  { %4932 = vmatpush3.msra.mxu1 %v4459_v54 }
0x1d50   :  { %4933 = vmatprep.subr.mxu1 %v4458_v30 }
0x1d51   :  { %4934 = vmatpush3.msra.mxu1 %v4458_v30 }
0x1d52   :  { %4935 = vmatprep.subr.mxu1 %v4457_v55 }
0x1d53   :  { %4936 = vmatpush3.msra.mxu1 %v4457_v55 }
0x1d54   :  { %4937 = vmatprep.subr.mxu1 %v4456_v16 }
0x1d55   :  { %4938 = vmatpush3.msra.mxu1 %v4456_v16  ;;  %v4261_v16 = vld [vmem:[%s5910_s16 + $0x18] sm:$0xff] }
0x1d56   :  { %4939 = vmatprep.subr.mxu1 %v4455_v56 }
0x1d57   :  { %4940 = vmatpush3.msra.mxu1 %v4455_v56  ;;  %v4260_v56 = vld [vmem:[%s5910_s16 + $0x10] sm:$0xff] }
0x1d58   :  { %4941 = vmatprep.subr.mxu1 %v4454_v57 }
0x1d59   :  { %4942 = vmatpush3.msra.mxu1 %v4454_v57  ;;  %v4259_v57 = vld [vmem:[%s5910_s16 + $0x8] sm:$0xff] }
0x1dfa   :  { %v4899_v62 = vpop.f32.mrf.mxu1 }
0x1dfb   :  { %v3930_v3 = vadd.f32 %v4899_v62, %v3513_v40 }
0x1dfc   :  { %v3920_v5 = vpop.f32.mrf.mxu1 }
0x1dfd   :  { %v3932_v6 = vadd.f32 %v3930_v3, %v5543_v42  ;;  %v3929_v7 = vadd.f32 %v3920_v5, %v3512_v0 }
0x1dff   :  { %v5766_v63 = vadd.f32 %v4442_v4, %v3932_v6  ;;  %v3931_v8 = vadd.f32 %v3929_v7, %v5546_v45 }
0x1e01   :  { %v5769_v9 = vadd.f32 %v4442_v4, %v3931_v8  ;;  %v3945_v2 = vsel %vm81_vm0, %v5766_v63, 0.0 }
0x1e02   :  { %3946 = vadd.xlane.f32.xlu0 %v3945_v2 }
0x1e03   :  { %v3942_v10 = vsel %vm81_vm0, %v5769_v9, 0.0 }
0x1e04   :  { %3943 = vadd.xlane.f32.xlu1 %v3942_v10 }
0x1e8b   :  { %v3947_v11 = vpop.xlane.xlu0 %3946 }
0x1e8c   :  { %v3949_v12 = vmul.f32 0.03125, %v3947_v11 }
0x1e8d   :  { %v3944_v13 = vpop.xlane.xlu1 %3943 }
0x1e8e   :  { %v3951_v42 = vsub.f32 %v5766_v63, %v3949_v12  ;;  %v3948_v14 = vmul.f32 0.03125, %v3944_v13 }
0x1e90   :  { %v3950_v15 = vsub.f32 %v5769_v9, %v3948_v14  ;;  %v3953_v37 = vmul.f32 %v3951_v42, %v3951_v42  ;;  %v4188_v14 = vstv %s4187_s12 }
0x1e91   :  { %vm4189_vm8 = vcmp.eq.s32.totalorder %v5281_v44, %v4188_v14 }
0x1e92   :  { %v3957_v45 = vsel %vm81_vm0, %v3953_v37, 0.0  ;;  %v3952_v17 = vmul.f32 %v3950_v15, %v3950_v15  ;;  %v4470_v37 = vld [vmem:[%s5907_s13 + $0x1] ss:$0 sm:$0xff] }
0x1e93   :  { %3958 = vadd.xlane.f32.xlu1 %v3957_v45 }
0x1e94   :  { %v3954_v39 = vsel %vm81_vm0, %v3952_v17, 0.0 }
0x1e95   :  { %3955 = vadd.xlane.f32.xlu0 %v3954_v39 }
0x1f1c   :  { %v3959_v23 = vpop.xlane.xlu1 %3958 }
0x1f1d   :  { %v3961_v24 = vmul.f32 0.03125, %v3959_v23  ;;  %v4471_v23 = vsel %vm4189_vm8, 1.0, %v5107_v34 }
0x1f1e   :  { %v3956_v25 = vpop.xlane.xlu0 %3955 }
0x1f1f   :  { %v3963_v26 = vadd.f32 1e-05, %v3961_v24  ;;  %v3960_v27 = vmul.f32 0.03125, %v3956_v25 }
0x1f21   :  { %5056 = vrsqrt.f32 %v3963_v26  ;;  %v3962_v29 = vadd.f32 1e-05, %v3960_v27 }
0x1f23   :  { %5058 = vrsqrt.f32 %v3962_v29 }
0x1f2e   :  { %v5057_v31 = vpop.eup %5056 }
0x1f2f   :  { %v3967_v33 = vmul.f32 %v5057_v31, %v3951_v42  ;;  %v4186_v42 = vadd.s32 8, %v5281_v44 }
0x1f30   :  { %v5059_v35 = vpop.eup %5058 }
0x1f31   :  { %v3966_v36 = vmul.f32 %v5059_v35, %v3950_v15  ;;  %v3973_v40 = vmul.f32 %v4443_v32, %v3967_v33  ;;  %v4208_v15 = vstv %s4207_s26  ;;  %vm4190_vm6 = vcmp.eq.s32.totalorder %v4186_v42, %v4188_v14 }
0x1f32   :  { %vm4210_vm7 = vcmp.eq.s32.totalorder %v4186_v42, %v4208_v15  ;;  %vm4209_vm9 = vcmp.eq.s32.totalorder %v5281_v44, %v4208_v15  ;;  %v4472_v39 = vsel %vm4190_vm6, 1.0, %v5107_v34 }
0x1f33   :  { %v3972_v0 = vmul.f32 %v4443_v32, %v3966_v36  ;;  %v3979_v47 = vadd.f32 %v4444_v41, %v3973_v40  ;;  %v4475_v19 = vsel %vm4210_vm7, 1.0, %v5107_v34  ;;  %v4474_v24 = vsel %vm4209_vm9, 1.0, %v5107_v34 }
0x1f35   :  { %v3978_v43 = vadd.f32 %v4444_v41, %v3972_v0 }
0x1f37   :  { %4908 = vmatprep.mubr.msk.f32.mxu0 %vm81_vm0, %v3978_v43 }
0x1f38   :  { %4909 = vmatmul.mubr.msk.f32.vlgmr.msra.gmra.mxu0 %vm81_vm0, %v3979_v47 }
0x1f39   :  { %4954 = vmatprep.mubr.msk.f32.mxu0 %vm5108_vm1, %v5107_v34  ;;  %4947 = vmatpush3.msra.mxu0 %v4261_v16 }
0x1f3a   :  { %4948 = vmatprep.subr.mxu0 %v5107_v34 }
0x1f3b   :  { %4949 = vmatpush3.msra.mxu0 %v4260_v56 }
0x1f3c   :  { %4950 = vmatprep.subr.mxu0 %v5107_v34 }
0x1f3d   :  { %4951 = vmatpush3.msra.mxu0 %v4259_v57 }
0x1f3e   :  { %4952 = vmatprep.subr.mxu0 %v5107_v34 }
0x1ff8   :  { %v4910_v18 = vpop.f32.mrf.mxu0 }
0x1ff9   :  { %v4068_v59 = vadd.f32 %v4910_v18, %v4449_v58 }
0x1ffa   :  { %v4062_v60 = vpop.f32.mrf.mxu0 }
0x1ffb   :  { %v4453_v61 = vmul.f32 -1.702, %v4068_v59  ;;  %v4063_v62 = vadd.f32 %v4449_v58, %v4062_v60  ;;  %v4258_v58 = vld [vmem:[%s5910_s16] sm:$0xff]  ;;  %s5120_s16 = smov [#allocation5]  }
0x1ffc   :  { %4953 = vmatpush3.msra.mxu0 %v4258_v58  ;;  %s4342_s21 = sshll.u32 %s5120_s16, 4  ;;  %s4343_s21 = int_to_ptr.vmem [resolvable:$true] %s4342_s21 }
0x1ffd   :  { %v4077_v3 = vmul.f32 1.442695, %v4453_v61  ;;  %v4452_v4 = vmul.f32 -1.702, %v4063_v62  ;;  %s5082_s8 = scalar_lea.vmem %s4343_s21, 32  ;;  %p5087_p6 = scmp.lt.s32.totalorder %s4343_s21, %s4343_s21 }
0x1ffe   :  { %p5083_p5 = scmp.ne.s32.totalorder %s4343_s21, %s5082_s8  ;;  %p5088_p7 = scmp.lt.s32.totalorder %s5082_s8, %s5082_s8 }
0x1fff   :  { %5060 = vpow2.f32 %v4077_v3  ;;  %v4075_v5 = vmul.f32 1.442695, %v4452_v4  ;;  %v4477_v4 = vld [vmem:[%s5909_s15] ss:$0 sm:$0xff] }
0x2000   :  { %p5089_p8 = por %p5088_p7, %p5087_p6 }
0x2001   :  { %5062 = vpow2.f32 %v4075_v5 }
0x2002   :  { %p5090_p9 = pnand %p5089_p8, %p5083_p5 }
0x200c   :  { %v5061_v6 = vpop.eup %5060 }
0x200d   :  { %v4080_v7 = vadd.f32 1.0, %v5061_v6 }
0x200e   :  { %v5063_v8 = vpop.eup %5062 }
0x200f   :  { %v4079_v2 = vadd.f32 1.0, %v5063_v8  ;;  %5064 = vrcp.f32 %v4080_v7 }
0x2011   :  { %5066 = vrcp.f32 %v4079_v2 }
0x201c   :  { %v5065_v10 = vpop.eup %5064 }
0x201d   :  { %v4086_v13 = vmul.f32 %v5065_v10, %v4068_v59 }
0x201e   :  { %v5067_v11 = vpop.eup %5066 }
0x201f   :  { %v4085_v12 = vmul.f32 %v5067_v11, %v4063_v62  ;;  %v4476_v62 = vld [vmem:[%s5908_s14] ss:$0 sm:$0xff] }
0x2021   :  { %4943 = vmatprep.mubr.f32.mxu1 %v4085_v12 }
0x2022   :  { %4944 = vmatmul.mubr.f32.vlgmr.msra.gmra.mxu1 %v4086_v13 }
0x20e2   :  { %v4945_v45 = vpop.f32.mrf.mxu1 }
0x20e3   :  { %v4181_v17 = vadd.f32 %v4945_v45, %v4470_v37 }
0x20e4   :  { %v4175_v20 = vpop.f32.mrf.mxu1 }
0x20e5   :  { %v4185_v21 = vadd.f32 %v4181_v17, %v5766_v63  ;;  %v4176_v22 = vadd.f32 %v4470_v37, %v4175_v20 }
0x20e7   :  { %v4196_v25 = vmul.f32 %v4472_v39, %v4185_v21  ;;  %v4216_v26 = vmul.f32 %v4475_v19, %v4185_v21  ;;  %v4184_v27 = vadd.f32 %v4176_v22, %v5769_v9 }
0x20e9   :  { %v4195_v29 = vmul.f32 %v4471_v23, %v4184_v27  ;;  %v4215_v31 = vmul.f32 %v4474_v24, %v4184_v27  ;;  %v4198_v44 = vsel %vm81_vm0, %v4196_v25, 0.0  ;;  %v4218_v32 = vsel %vm81_vm0, %v4216_v26, 0.0 }
0x20eb   :  { %v4197_v33 = vsel %vm81_vm0, %v4195_v29, 0.0  ;;  %v4217_v35 = vsel %vm81_vm0, %v4215_v31, 0.0 }
0x20ec   :  { %v4199_v63 = vadd.f32 %v4198_v44, %v4197_v33  ;;  %v4219_v36 = vadd.f32 %v4218_v32, %v4217_v35 }
0x20ee   :  { %v4200_v40 = vrot.slane %v4199_v63, 4  ;;  %v4220_v41 = vrot.slane %v4219_v36, 4 }
0x20f0   :  { %v4201_v0 = vadd.f32 %v4200_v40, %v4199_v63  ;;  %v4221_v43 = vadd.f32 %v4220_v41, %v4219_v36 }
0x20f2   :  { %v4202_v47 = vrot.slane %v4201_v0, 2  ;;  %v4222_v48 = vrot.slane %v4221_v43, 2 }
0x20f4   :  { %v4203_v49 = vadd.f32 %v4202_v47, %v4201_v0  ;;  %v4223_v9 = vadd.f32 %v4222_v48, %v4221_v43 }
0x20f6   :  { %v4204_v50 = vrot.slane %v4203_v49, 1  ;;  %v4224_v1 = vrot.slane %v4223_v9, 1 }
0x20f8   :  { %v4205_v51 = vadd.f32 %v4204_v50, %v4203_v49  ;;  %v4225_v52 = vadd.f32 %v4224_v1, %v4223_v9 }
0x20fa   :  { %v4227_v53 = vsel %vm4226_vm10, %v4205_v51, %v4225_v52 }
0x20fb   :  { %v4231_v38 = vsel %vm4230_vm11, %v4227_v53, 0.0 }
0x20fc   :  { %4232 = vadd.xlane.f32.xlu0 %v4231_v38 }
0x2185   :  { %v4233_v28 = vpop.xlane.xlu0 %4232 }
0x2186   :  { %v4234_v46 = vmul.f32 0.03125, %v4233_v28 }
0x2188   :  { %v4235_v54 = vsub.f32 %v4227_v53, %v4234_v46 }
0x218a   :  { %v4236_v30 = vmul.f32 %v4235_v54, %v4235_v54 }
0x218c   :  { %v4237_v55 = vsel %vm4230_vm11, %v4236_v30, 0.0 }
0x218d   :  { %4238 = vadd.xlane.f32.xlu1 %v4237_v55 }
0x2216   :  { %v4239_v18 = vpop.xlane.xlu1 %4238 }
0x2217   :  { %v4240_v59 = vmul.f32 0.03125, %v4239_v18 }
0x2219   :  { %v4241_v60 = vadd.f32 1e-05, %v4240_v59 }
0x221b   :  { %5068 = vrsqrt.f32 %v4241_v60 }
0x2228   :  { %v5069_v61 = vpop.eup %5068 }
0x2229   :  { %v4243_v3 = vmul.f32 %v5069_v61, %v4235_v54 }
0x222b   :  { %v4250_v5 = vmul.f32 %v4476_v62, %v4243_v3 }
0x222d   :  { %v4257_v6 = vadd.f32 %v4477_v4, %v4250_v5 }
0x222f   :  { %4955 = vmatmul.mubr.msk.f32.vlgmr.msra.gmra.mxu0 %vm81_vm0, %v4257_v6 }
0x22ef   :  { %v4331_v34 = vpop.f32.mrf.mxu0 }
0x22f0   :  { %4335 = vst [vmem:[#allocation5] sm:$0x3] %v4331_v34 }
0x22f1   :  { %v4956_v7 = vpop.f32.mrf.mxu0 }
0x22f2   :  { %5093 = shalt.err (!%p5090_p9)
}
0x22f3   :  { %4345 = dma.vmem_to_hbm [thread:$0]  %s4343_s21, 32, %s5911_s17, [#allocation3]  }
0x22f4   :  { %5104 = dma.done.wait [#allocation3], 32  }
0x22f5   :  { %5105 = vsyncadd [#allocation3], 4294967264 }
0x22f6   :  { %4349 = vsyncpa [#allocation3], 1 }
0x22f7   :  { %4350 = vsyncpa [#allocation4], 1 }

</bundles_post_ra>
